<compile_context>
chip_gen: v5e
topology: v5e:2x2
jax: 0.10.0
libtpu: 0.0.40
codegen_flags: <defaults>
</compile_context>

<pallas_src>
import functools

import jax
import jax.numpy as jnp
from jax.experimental import pallas as pl
from jax.experimental.pallas import tpu as pltpu

BN_EPS = 1e-5
_LANE = 128
_SUBLANE = 8


def _round_up(x, m):
    return (x + m - 1) // m * m


def _vmem_capacity_bytes():
    """Per-generation VMEM capacity (64 MiB v7x, 128 MiB v5e/v6e)."""
    try:
        return int(pltpu.get_tpu_info().vmem_capacity_bytes)
    except Exception:
        return 64 * 1024 * 1024          # conservative default (v7x)


# ---------------------------------------------------------------------------
# Phase 1a (fused, stride==1): conv as KH*KW shifted matmuls from one resident
# padded image + per-image channel sum / sum-of-squares.
# ---------------------------------------------------------------------------
def _fused_conv_stats_kernel(x_ref, w_ref, y_ref, stats_ref, acc_ref, *,
                             kh, kw, cin, oh, ow):
    # x_ref:     [1, Hp, Wp, Cin]      one padded image (compute dtype)
    # w_ref:     [KH*KW*Cin, Cout_p]   VMEM-resident flattened weight
    # y_ref:     [1, OH*OW, Cout_p]    conv output (compute dtype)
    # stats_ref: [1, 2, Cout_p]        f32: row 0 = sum, row 1 = sum of squares
    # acc_ref:   VMEM scratch [OH*OW, Cout_p] f32
    for q in range(kh * kw):
        i, j = q // kw, q % kw
        xs = x_ref[0, pl.ds(i, oh), pl.ds(j, ow), :]       # [OH, OW, Cin]
        lhs = xs.reshape(oh * ow, cin)                     # OW % 8 == 0 -> cheap
        rhs = w_ref[pl.ds(q * cin, cin), :]                # [Cin, Cout_p]
        part = jnp.dot(lhs, rhs, preferred_element_type=jnp.float32)
        if q == 0:
            acc_ref[...] = part          # direct assign: no zero-init pass
        else:
            acc_ref[...] += part
    acc = acc_ref[...]
    y_ref[0] = acc.astype(y_ref.dtype)
    stats_ref[0, 0:1, :] = jnp.sum(acc, axis=0, keepdims=True)
    stats_ref[0, 1:2, :] = jnp.sum(acc * acc, axis=0, keepdims=True)


# ---------------------------------------------------------------------------
# Phase 1b (fallback): im2col matmul + per-M-tile channel sum / sum-of-squares.
# ---------------------------------------------------------------------------
def _matmul_stats_kernel(p_ref, w_ref, y_ref, stats_ref, acc_ref):
    ki = pl.program_id(1)
    nk = pl.num_programs(1)
    part = jnp.dot(p_ref[...], w_ref[...], preferred_element_type=jnp.float32)

    @pl.when(ki == 0)
    def _():
        acc_ref[...] = part              # direct assign on the first K step

    @pl.when(ki != 0)
    def _():
        acc_ref[...] += part

    @pl.when(ki == nk - 1)
    def _():
        acc = acc_ref[...]
        y_ref[...] = acc.astype(y_ref.dtype)
        stats_ref[0, 0:1, :] = jnp.sum(acc, axis=0, keepdims=True)
        stats_ref[0, 1:2, :] = jnp.sum(acc * acc, axis=0, keepdims=True)


# ---------------------------------------------------------------------------
# Phase 2: y * scale + shift  (BatchNorm folded into a per-channel affine).
# ---------------------------------------------------------------------------
def _bn_apply_kernel(y_ref, scale_ref, shift_ref, o_ref):
    y = y_ref[...].astype(jnp.float32)
    o_ref[...] = (y * scale_ref[...] + shift_ref[...]).astype(o_ref.dtype)


def _im2col_nhwc(x_nhwc, kh, kw, stride, padding):
    """Fallback-path glue: extract conv patches. Returns [N*OH*OW, KH*KW*Cin]."""
    n, h, w, c = x_nhwc.shape
    xp = jnp.pad(x_nhwc, ((0, 0), (padding, padding), (padding, padding), (0, 0)))
    oh = (h + 2 * padding - kh) // stride + 1
    ow = (w + 2 * padding - kw) // stride + 1
    pieces = []
    for i in range(kh):
        for j in range(kw):
            pieces.append(
                xp[:, i:i + (oh - 1) * stride + 1:stride,
                      j:j + (ow - 1) * stride + 1:stride, :])    # [N, OH, OW, Cin]
    patches = jnp.stack(pieces, axis=3).reshape(n, oh, ow, kh * kw * c)
    return patches.reshape(n * oh * ow, kh * kw * c)


@functools.partial(jax.jit,
                   static_argnames=("stride", "padding", "compute_dtype", "impl"))
def basic_conv2d(x_nchw, conv_weight_oihw, bn_gamma, bn_beta, *,
                 stride, padding, compute_dtype=jnp.bfloat16, impl="auto"):
    """Forward of BasicConv2d. x: [N, Cin, H, W] NCHW (like PyTorch).

    compute_dtype selects the MXU operand / y-intermediate dtype (bf16 by
    default); accumulation and BN statistics are always f32.
    impl: "auto" | "fused" | "im2col".
    """
    n, cin, h, w = x_nchw.shape
    cout, _, kh, kw = conv_weight_oihw.shape
    oh = (h + 2 * padding - kh) // stride + 1
    ow = (w + 2 * padding - kw) // stride + 1
    hp, wp = h + 2 * padding, w + 2 * padding
    m = n * oh * ow
    k = kh * kw * cin
    cout_p = _round_up(cout, _LANE)
    itemsize = jnp.dtype(compute_dtype).itemsize

    vmem_cap = _vmem_capacity_bytes()
    vmem_budget = int(vmem_cap * 0.45)               # headroom for compiler scratch
    vmem_limit = min(int(vmem_cap * 0.70), 96 * 1024 * 1024)

    # ---- shared glue: cast once, flatten weight, pad gamma/beta -------------
    x_nhwc = jnp.transpose(x_nchw, (0, 2, 3, 1)).astype(compute_dtype)
    w_mat = jnp.transpose(conv_weight_oihw, (2, 3, 1, 0)).reshape(k, cout)
    w_mat = w_mat.astype(compute_dtype)
    w_p = w_mat if cout_p == cout else jnp.pad(w_mat, ((0, 0), (0, cout_p - cout)))
    gamma_p = jnp.zeros((1, cout_p), jnp.float32).at[0, :cout].set(
        bn_gamma.astype(jnp.float32))
    beta_p = jnp.zeros((1, cout_p), jnp.float32).at[0, :cout].set(
        bn_beta.astype(jnp.float32))

    # ---- choose implementation ----------------------------------------------
    img_bytes = hp * _round_up(wp, _SUBLANE) * _round_up(cin, _LANE) * itemsize
    yblk_bytes = _round_up(oh * ow, _SUBLANE) * cout_p * itemsize
    acc_bytes = _round_up(oh * ow, _SUBLANE) * cout_p * 4
    wres_bytes = _round_up(k, _SUBLANE) * cout_p * itemsize
    fused_bytes = 2 * img_bytes + 2 * yblk_bytes + acc_bytes + wres_bytes
    fused_ok = (stride == 1) and (ow % _SUBLANE == 0) and (fused_bytes <= vmem_budget)
    if impl == "fused":
        assert fused_ok, "fused path requires stride==1, OW%8==0 and VMEM fit"
        use_fused = True
    elif impl == "im2col":
        use_fused = False
    else:
        use_fused = fused_ok

    if use_fused:
        # ---- phase 1a: no HBM im2col; one padded image resident per step ----
        xp = jnp.pad(x_nhwc,
                     ((0, 0), (padding, padding), (padding, padding), (0, 0)))
        kernel = functools.partial(_fused_conv_stats_kernel,
                                   kh=kh, kw=kw, cin=cin, oh=oh, ow=ow)
        y3, stats = pl.pallas_call(
            kernel,
            out_shape=(jax.ShapeDtypeStruct((n, oh * ow, cout_p), compute_dtype),
                       jax.ShapeDtypeStruct((n, 2, cout_p), jnp.float32)),
            grid=(n,),
            in_specs=[
                pl.BlockSpec((1, hp, wp, cin), lambda b: (b, 0, 0, 0)),
                pl.BlockSpec((k, cout_p), lambda b: (0, 0)),      # resident weight
            ],
            out_specs=(
                pl.BlockSpec((1, oh * ow, cout_p), lambda b: (b, 0, 0)),
                pl.BlockSpec((1, 2, cout_p), lambda b: (b, 0, 0)),
            ),
            scratch_shapes=[pltpu.VMEM((oh * ow, cout_p), jnp.float32)],
            compiler_params=pltpu.CompilerParams(
                dimension_semantics=("parallel",),
                vmem_limit_bytes=vmem_limit),
        )(xp, w_p)
        y_flat = y3.reshape(n * oh * ow, cout_p)
        m_rows = n * oh * ow
        tm2 = oh * ow
    else:
        # ---- phase 1b: im2col fallback (stride>1 / ragged / oversized) ------
        patches = _im2col_nhwc(x_nhwc, kh, kw, stride, padding)     # [m, k]

        # Keep the whole weight resident whenever it fits; else stream K tiles.
        if wres_bytes <= vmem_budget // 2:
            tk = k
        else:
            tk = 512
        k_p = _round_up(k, tk)
        k_tiles = k_p // tk

        def p1_bytes(tm_):
            b = 2 * tm_ * _round_up(tk, _LANE) * itemsize     # patch blocks (x2)
            b += (1 if k_tiles == 1 else 2) * _round_up(tk, _SUBLANE) * cout_p * itemsize
            b += tm_ * cout_p * 4                             # f32 accumulator
            b += 2 * tm_ * cout_p * itemsize                  # y blocks (x2)
            b += 4 * _SUBLANE * cout_p * 4                    # stats blocks (tiny)
            return b

        m8 = _round_up(m, _SUBLANE)
        tm = _SUBLANE
        for cand in (1024, 512, 256, 128, 64, 32, 16, 8):
            if p1_bytes(cand) <= vmem_budget:
                tm = cand
                break
        tm = min(tm, m8)
        m_p = _round_up(m, tm)
        m_tiles = m_p // tm

        if (m_p, k_p) != (m, k):
            patches = jnp.pad(patches, ((0, m_p - m), (0, k_p - k)))
        w_pk = w_p if k_p == k else jnp.pad(w_p, ((0, k_p - k), (0, 0)))

        y_flat, stats = pl.pallas_call(
            _matmul_stats_kernel,
            out_shape=(jax.ShapeDtypeStruct((m_p, cout_p), compute_dtype),
                       jax.ShapeDtypeStruct((m_tiles, 2, cout_p), jnp.float32)),
            grid=(m_tiles, k_tiles),
            in_specs=[
                pl.BlockSpec((tm, tk), lambda i, j: (i, j)),
                pl.BlockSpec((tk, cout_p), lambda i, j: (j, 0)),
            ],
            out_specs=(
                pl.BlockSpec((tm, cout_p), lambda i, j: (i, 0)),
                pl.BlockSpec((1, 2, cout_p), lambda i, j: (i, 0, 0)),
            ),
            scratch_shapes=[pltpu.VMEM((tm, cout_p), jnp.float32)],
            compiler_params=pltpu.CompilerParams(
                dimension_semantics=("parallel", "arbitrary"),
                vmem_limit_bytes=vmem_limit),
        )(patches, w_pk)
        m_rows = m_p
        tm2 = tm

    # ---- glue: combine partial stats, fold BN into per-channel affine -------
    # Padded M rows (im2col path) are explicit zeros and contribute nothing;
    # divide by the true element count m.
    s_sum = jnp.sum(stats[:, 0, :], axis=0, keepdims=True)       # [1, Cout_p]
    s_ssq = jnp.sum(stats[:, 1, :], axis=0, keepdims=True)
    inv_m = 1.0 / float(m)
    mean = s_sum * inv_m
    var = jnp.maximum(s_ssq * inv_m - mean * mean, 0.0)
    inv_std = jax.lax.rsqrt(var + BN_EPS)
    scale = gamma_p * inv_std
    shift = beta_p - mean * scale

    # ---- phase 2: lane-dense normalize, M axis parallel ----------------------
    out_flat = pl.pallas_call(
        _bn_apply_kernel,
        out_shape=jax.ShapeDtypeStruct((m_rows, cout_p), x_nchw.dtype),
        grid=(m_rows // tm2,),
        in_specs=[
            pl.BlockSpec((tm2, cout_p), lambda i: (i, 0)),
            pl.BlockSpec((1, cout_p), lambda i: (0, 0)),
            pl.BlockSpec((1, cout_p), lambda i: (0, 0)),
        ],
        out_specs=pl.BlockSpec((tm2, cout_p), lambda i: (i, 0)),
        compiler_params=pltpu.CompilerParams(
            dimension_semantics=("parallel",),
            vmem_limit_bytes=vmem_limit),
    )(y_flat, scale, shift)

    out_nhwc = out_flat[:m, :cout].reshape(n, oh, ow, cout)
    return jnp.transpose(out_nhwc, (0, 3, 1, 2))          # back to NCHW


def _reference(x_nchw, w_oihw, gamma, beta, *, stride, padding):
    """Pure-JAX f32 reference (conv + training-mode BN) for sanity checking."""
    y = jax.lax.conv_general_dilated(
        x_nchw.astype(jnp.float32), w_oihw.astype(jnp.float32),
        window_strides=(stride, stride),
        padding=[(padding, padding), (padding, padding)],
        dimension_numbers=("NCHW", "OIHW", "NCHW"))
    mean = jnp.mean(y, axis=(0, 2, 3), keepdims=True)
    var = jnp.mean((y - mean) ** 2, axis=(0, 2, 3), keepdims=True)
    yhat = (y - mean) * jax.lax.rsqrt(var + BN_EPS)
    return yhat * gamma.reshape(1, -1, 1, 1) + beta.reshape(1, -1, 1, 1)


if __name__ == "__main__":
    key = jax.random.PRNGKey(0)
    kx, kw_, kg, kb, kx2, kx3 = jax.random.split(key, 6)

    # BasicConv2d(in_planes=4, out_planes=8, kernel_size=3, stride=1, padding=1)
    N, Cin, Cout, H, K, S, P = 2, 4, 8, 16, 3, 1, 1
    x = jax.random.normal(kx, (N, Cin, H, H), dtype=jnp.float32)
    conv_w = 0.1 * jax.random.normal(kw_, (Cout, Cin, K, K), dtype=jnp.float32)
    gamma = jnp.ones((Cout,), dtype=jnp.float32)    # nn.BatchNorm2d default init
    beta = jnp.zeros((Cout,), dtype=jnp.float32)

    ref = _reference(x, conv_w, gamma, beta, stride=S, padding=P)

    # Fused path, exact semantics (f32 MXU operands): tight tolerance.
    out_f32 = jax.block_until_ready(
        basic_conv2d(x, conv_w, gamma, beta, stride=S, padding=P,
                     compute_dtype=jnp.float32))
    assert out_f32.shape == (N, Cout, H, H), out_f32.shape
    assert jnp.allclose(out_f32, ref, rtol=1e-4, atol=1e-4), float(
        jnp.max(jnp.abs(out_f32 - ref)))

    # Fused path, fast mode (bf16 operands / bf16 y, f32 accumulation & stats).
    out_bf16 = jax.block_until_ready(
        basic_conv2d(x, conv_w, gamma, beta, stride=S, padding=P,
                     compute_dtype=jnp.bfloat16))
    assert jnp.allclose(out_bf16, ref, rtol=5e-2, atol=5e-2), float(
        jnp.max(jnp.abs(out_bf16 - ref)))

    # Larger spatial case with non-default gamma/beta: fused (auto) path and
    # forced im2col path (multiple M tiles -> exercises the per-tile partial
    # statistics reduction that makes the M axis 'parallel').
    H2 = 32
    x2 = jax.random.normal(kx2, (N, Cin, H2, H2), dtype=jnp.float32)
    gamma2 = 1.0 + 0.1 * jax.random.normal(kg, (Cout,), dtype=jnp.float32)
    beta2 = 0.1 * jax.random.normal(kb, (Cout,), dtype=jnp.float32)
    ref2 = _reference(x2, conv_w, gamma2, beta2, stride=S, padding=P)
    out2 = jax.block_until_ready(
        basic_conv2d(x2, conv_w, gamma2, beta2, stride=S, padding=P,
                     compute_dtype=jnp.float32))
    assert jnp.allclose(out2, ref2, rtol=1e-4, atol=1e-4), float(
        jnp.max(jnp.abs(out2 - ref2)))
    out2b = jax.block_until_ready(
        basic_conv2d(x2, conv_w, gamma2, beta2, stride=S, padding=P,
                     compute_dtype=jnp.float32, impl="im2col"))
    assert jnp.allclose(out2b, ref2, rtol=1e-4, atol=1e-4), float(
        jnp.max(jnp.abs(out2b - ref2)))

    # Ragged stride-2 case (M=49, OW=7): automatically falls back to the
    # im2col path and exercises M padding + divide-by-true-M statistics.
    N3, H3, S3, P3 = 1, 13, 2, 1
    x3 = jax.random.normal(kx3, (N3, Cin, H3, H3), dtype=jnp.float32)
    ref3 = _reference(x3, conv_w, gamma2, beta2, stride=S3, padding=P3)
    out3 = jax.block_until_ready(
        basic_conv2d(x3, conv_w, gamma2, beta2, stride=S3, padding=P3,
                     compute_dtype=jnp.float32))
    assert out3.shape == ref3.shape, (out3.shape, ref3.shape)
    assert jnp.allclose(out3, ref3, rtol=1e-4, atol=1e-4), float(
        jnp.max(jnp.abs(out3 - ref3)))

    print("KERNEL_OK")
</pallas_src>

<mosaic_0001>
module attributes {stable_mosaic.version = 11 : i64} {
  func.func @_bn_apply_kernel(%arg0: i32, %arg1: memref<256x128xf32, #tpu.memory_space<vmem>>, %arg2: memref<1x128xf32, #tpu.memory_space<vmem>>, %arg3: memref<1x128xf32, #tpu.memory_space<vmem>>, %arg4: memref<256x128xf32, #tpu.memory_space<vmem>>) attributes {dimension_semantics = [#tpu.dimension_semantics<parallel>], iteration_bounds = array<i64: 2>, scalar_prefetch = 0 : i64, scratch_operands = 0 : i64, tpu.core_type = #tpu.core_type<tc>, window_params = [{transform_indices = @transform_0, window_bounds = array<i64: 256, 128>}, {pipeline_mode = #tpu.pipeline_mode<synchronous>, transform_indices = @transform_1, window_bounds = array<i64: 1, 128>}, {pipeline_mode = #tpu.pipeline_mode<synchronous>, transform_indices = @transform_2, window_bounds = array<i64: 1, 128>}, {transform_indices = @transform_3, window_bounds = array<i64: 256, 128>}]} {
    %c0 = arith.constant 0 : index
    %c0_0 = arith.constant 0 : index
    %0 = vector.load %arg1[%c0, %c0_0] : memref<256x128xf32, #tpu.memory_space<vmem>>, vector<256x128xf32>
    %c0_1 = arith.constant 0 : index
    %c0_2 = arith.constant 0 : index
    %1 = vector.load %arg2[%c0_1, %c0_2] : memref<1x128xf32, #tpu.memory_space<vmem>>, vector<1x128xf32>
    %2 = vector.broadcast %1 : vector<1x128xf32> to vector<256x128xf32>
    %3 = arith.mulf %0, %2 : vector<256x128xf32>
    %c0_3 = arith.constant 0 : index
    %c0_4 = arith.constant 0 : index
    %4 = vector.load %arg3[%c0_3, %c0_4] : memref<1x128xf32, #tpu.memory_space<vmem>>, vector<1x128xf32>
    %5 = vector.broadcast %4 : vector<1x128xf32> to vector<256x128xf32>
    %6 = arith.addf %3, %5 : vector<256x128xf32>
    %c0_5 = arith.constant 0 : index
    %c0_6 = arith.constant 0 : index
    %7 = vector.load %arg4[%c0_5, %c0_6] : memref<256x128xf32, #tpu.memory_space<vmem>>, vector<256x128xf32>
    tpu.vector_store %arg4[%c0_5, %c0_6], %6 {strides = array<i32>} : memref<256x128xf32, #tpu.memory_space<vmem>>, vector<256x128xf32>,
    return
  }
  func.func @transform_0(%arg0: i32) -> (i32, i32) {
    %c0_i32 = arith.constant 0 : i32
    %c0_i32_0 = arith.constant 0 : i32
    return %arg0, %c0_i32 : i32, i32
  }
  func.func @transform_1(%arg0: i32) -> (i32, i32) {
    %c0_i32 = arith.constant 0 : i32
    %c0_i32_0 = arith.constant 0 : i32
    %c0_i32_1 = arith.constant 0 : i32
    return %c0_i32, %c0_i32_0 : i32, i32
  }
  func.func @transform_2(%arg0: i32) -> (i32, i32) {
    %c0_i32 = arith.constant 0 : i32
    %c0_i32_0 = arith.constant 0 : i32
    %c0_i32_1 = arith.constant 0 : i32
    return %c0_i32, %c0_i32_0 : i32, i32
  }
  func.func @transform_3(%arg0: i32) -> (i32, i32) {
    %c0_i32 = arith.constant 0 : i32
    %c0_i32_0 = arith.constant 0 : i32
    return %arg0, %c0_i32 : i32, i32
  }
}

module attributes {stable_mosaic.version = 11 : i64} {
  func.func @_fused_conv_stats_kernel(%arg0: i32, %arg1: memref<1x18x18x4xf32, #tpu.memory_space<vmem>>, %arg2: memref<36x128xf32, #tpu.memory_space<vmem>>, %arg3: memref<1x256x128xf32, #tpu.memory_space<vmem>>, %arg4: memref<1x2x128xf32, #tpu.memory_space<vmem>>, %arg5: memref<256x128xf32, #tpu.memory_space<vmem>>) attributes {dimension_semantics = [#tpu.dimension_semantics<parallel>], iteration_bounds = array<i64: 2>, scalar_prefetch = 0 : i64, scratch_operands = 1 : i64, tpu.core_type = #tpu.core_type<tc>, window_params = [{transform_indices = @transform_0, window_bounds = array<i64: 1, 18, 18, 4>}, {pipeline_mode = #tpu.pipeline_mode<synchronous>, transform_indices = @transform_1, window_bounds = array<i64: 36, 128>}, {transform_indices = @transform_2, window_bounds = array<i64: 1, 256, 128>}, {transform_indices = @transform_3, window_bounds = array<i64: 1, 2, 128>}]} {
    %c0 = arith.constant 0 : index
    %c0_0 = arith.constant 0 : index
    %c0_1 = arith.constant 0 : index
    %c0_2 = arith.constant 0 : index
    %0 = vector.load %arg1[%c0, %c0_0, %c0_1, %c0_2] : memref<1x18x18x4xf32, #tpu.memory_space<vmem>>, vector<1x16x16x4xf32>
    %1 = vector.shape_cast %0 : vector<1x16x16x4xf32> to vector<16x16x4xf32>
    %2 = vector.shape_cast %1 : vector<16x16x4xf32> to vector<256x4xf32>
    %c0_3 = arith.constant 0 : index
    %c0_4 = arith.constant 0 : index
    %3 = vector.load %arg2[%c0_3, %c0_4] : memref<36x128xf32, #tpu.memory_space<vmem>>, vector<4x128xf32>
    %cst = arith.constant dense<0.000000e+00> : vector<256x128xf32>
    %4 = tpu.matmul %2, %3, %cst {dimension_numbers = #tpu.dot_dimension_numbers<[1], [0], [0], [1], [0, 0, 1, 1], [], []>} : vector<256x4xf32>, vector<4x128xf32>, vector<256x128xf32> -> vector<256x128xf32>
    %c0_5 = arith.constant 0 : index
    %c0_6 = arith.constant 0 : index
    %5 = vector.load %arg5[%c0_5, %c0_6] : memref<256x128xf32, #tpu.memory_space<vmem>>, vector<256x128xf32>
    tpu.vector_store %arg5[%c0_5, %c0_6], %4 {strides = array<i32>} : memref<256x128xf32, #tpu.memory_space<vmem>>, vector<256x128xf32>,
    %c0_7 = arith.constant 0 : index
    %c0_8 = arith.constant 0 : index
    %c1 = arith.constant 1 : index
    %c0_9 = arith.constant 0 : index
    %6 = vector.load %arg1[%c0_7, %c0_8, %c1, %c0_9] : memref<1x18x18x4xf32, #tpu.memory_space<vmem>>, vector<1x16x16x4xf32>
    %7 = vector.shape_cast %6 : vector<1x16x16x4xf32> to vector<16x16x4xf32>
    %8 = vector.shape_cast %7 : vector<16x16x4xf32> to vector<256x4xf32>
    %c4 = arith.constant 4 : index
    %c0_10 = arith.constant 0 : index
    %9 = vector.load %arg2[%c4, %c0_10] : memref<36x128xf32, #tpu.memory_space<vmem>>, vector<4x128xf32>
    %cst_11 = arith.constant dense<0.000000e+00> : vector<256x128xf32>
    %10 = tpu.matmul %8, %9, %cst_11 {dimension_numbers = #tpu.dot_dimension_numbers<[1], [0], [0], [1], [0, 0, 1, 1], [], []>} : vector<256x4xf32>, vector<4x128xf32>, vector<256x128xf32> -> vector<256x128xf32>
    %c0_12 = arith.constant 0 : index
    %c0_13 = arith.constant 0 : index
    %11 = vector.load %arg5[%c0_12, %c0_13] : memref<256x128xf32, #tpu.memory_space<vmem>>, vector<256x128xf32>
    %12 = arith.addf %11, %10 : vector<256x128xf32>
    %c0_14 = arith.constant 0 : index
    %c0_15 = arith.constant 0 : index
    %13 = vector.load %arg5[%c0_14, %c0_15] : memref<256x128xf32, #tpu.memory_space<vmem>>, vector<256x128xf32>
    tpu.vector_store %arg5[%c0_14, %c0_15], %12 {strides = array<i32>} : memref<256x128xf32, #tpu.memory_space<vmem>>, vector<256x128xf32>,
    %c0_16 = arith.constant 0 : index
    %c0_17 = arith.constant 0 : index
    %c2 = arith.constant 2 : index
    %c0_18 = arith.constant 0 : index
    %14 = vector.load %arg1[%c0_16, %c0_17, %c2, %c0_18] : memref<1x18x18x4xf32, #tpu.memory_space<vmem>>, vector<1x16x16x4xf32>
    %15 = vector.shape_cast %14 : vector<1x16x16x4xf32> to vector<16x16x4xf32>
    %16 = vector.shape_cast %15 : vector<16x16x4xf32> to vector<256x4xf32>
    %c8 = arith.constant 8 : index
    %c0_19 = arith.constant 0 : index
    %17 = vector.load %arg2[%c8, %c0_19] : memref<36x128xf32, #tpu.memory_space<vmem>>, vector<4x128xf32>
    %cst_20 = arith.constant dense<0.000000e+00> : vector<256x128xf32>
    %18 = tpu.matmul %16, %17, %cst_20 {dimension_numbers = #tpu.dot_dimension_numbers<[1], [0], [0], [1], [0, 0, 1, 1], [], []>} : vector<256x4xf32>, vector<4x128xf32>, vector<256x128xf32> -> vector<256x128xf32>
    %c0_21 = arith.constant 0 : index
    %c0_22 = arith.constant 0 : index
    %19 = vector.load %arg5[%c0_21, %c0_22] : memref<256x128xf32, #tpu.memory_space<vmem>>, vector<256x128xf32>
    %20 = arith.addf %19, %18 : vector<256x128xf32>
    %c0_23 = arith.constant 0 : index
    %c0_24 = arith.constant 0 : index
    %21 = vector.load %arg5[%c0_23, %c0_24] : memref<256x128xf32, #tpu.memory_space<vmem>>, vector<256x128xf32>
    tpu.vector_store %arg5[%c0_23, %c0_24], %20 {strides = array<i32>} : memref<256x128xf32, #tpu.memory_space<vmem>>, vector<256x128xf32>,
    %c0_25 = arith.constant 0 : index
    %c1_26 = arith.constant 1 : index
    %c0_27 = arith.constant 0 : index
    %c0_28 = arith.constant 0 : index
    %22 = vector.load %arg1[%c0_25, %c1_26, %c0_27, %c0_28] : memref<1x18x18x4xf32, #tpu.memory_space<vmem>>, vector<1x16x16x4xf32>
    %23 = vector.shape_cast %22 : vector<1x16x16x4xf32> to vector<16x16x4xf32>
    %24 = vector.shape_cast %23 : vector<16x16x4xf32> to vector<256x4xf32>
    %c12 = arith.constant 12 : index
    %c0_29 = arith.constant 0 : index
    %25 = vector.load %arg2[%c12, %c0_29] : memref<36x128xf32, #tpu.memory_space<vmem>>, vector<4x128xf32>
    %cst_30 = arith.constant dense<0.000000e+00> : vector<256x128xf32>
    %26 = tpu.matmul %24, %25, %cst_30 {dimension_numbers = #tpu.dot_dimension_numbers<[1], [0], [0], [1], [0, 0, 1, 1], [], []>} : vector<256x4xf32>, vector<4x128xf32>, vector<256x128xf32> -> vector<256x128xf32>
    %c0_31 = arith.constant 0 : index
    %c0_32 = arith.constant 0 : index
    %27 = vector.load %arg5[%c0_31, %c0_32] : memref<256x128xf32, #tpu.memory_space<vmem>>, vector<256x128xf32>
    %28 = arith.addf %27, %26 : vector<256x128xf32>
    %c0_33 = arith.constant 0 : index
    %c0_34 = arith.constant 0 : index
    %29 = vector.load %arg5[%c0_33, %c0_34] : memref<256x128xf32, #tpu.memory_space<vmem>>, vector<256x128xf32>
    tpu.vector_store %arg5[%c0_33, %c0_34], %28 {strides = array<i32>} : memref<256x128xf32, #tpu.memory_space<vmem>>, vector<256x128xf32>,
    %c0_35 = arith.constant 0 : index
    %c1_36 = arith.constant 1 : index
    %c1_37 = arith.constant 1 : index
    %c0_38 = arith.constant 0 : index
    %30 = vector.load %arg1[%c0_35, %c1_36, %c1_37, %c0_38] : memref<1x18x18x4xf32, #tpu.memory_space<vmem>>, vector<1x16x16x4xf32>
    %31 = vector.shape_cast %30 : vector<1x16x16x4xf32> to vector<16x16x4xf32>
    %32 = vector.shape_cast %31 : vector<16x16x4xf32> to vector<256x4xf32>
    %c16 = arith.constant 16 : index
    %c0_39 = arith.constant 0 : index
    %33 = vector.load %arg2[%c16, %c0_39] : memref<36x128xf32, #tpu.memory_space<vmem>>, vector<4x128xf32>
    %cst_40 = arith.constant dense<0.000000e+00> : vector<256x128xf32>
    %34 = tpu.matmul %32, %33, %cst_40 {dimension_numbers = #tpu.dot_dimension_numbers<[1], [0], [0], [1], [0, 0, 1, 1], [], []>} : vector<256x4xf32>, vector<4x128xf32>, vector<256x128xf32> -> vector<256x128xf32>
    %c0_41 = arith.constant 0 : index
    %c0_42 = arith.constant 0 : index
    %35 = vector.load %arg5[%c0_41, %c0_42] : memref<256x128xf32, #tpu.memory_space<vmem>>, vector<256x128xf32>
    %36 = arith.addf %35, %34 : vector<256x128xf32>
    %c0_43 = arith.constant 0 : index
    %c0_44 = arith.constant 0 : index
    %37 = vector.load %arg5[%c0_43, %c0_44] : memref<256x128xf32, #tpu.memory_space<vmem>>, vector<256x128xf32>
    tpu.vector_store %arg5[%c0_43, %c0_44], %36 {strides = array<i32>} : memref<256x128xf32, #tpu.memory_space<vmem>>, vector<256x128xf32>,
    %c0_45 = arith.constant 0 : index
    %c1_46 = arith.constant 1 : index
    %c2_47 = arith.constant 2 : index
    %c0_48 = arith.constant 0 : index
    %38 = vector.load %arg1[%c0_45, %c1_46, %c2_47, %c0_48] : memref<1x18x18x4xf32, #tpu.memory_space<vmem>>, vector<1x16x16x4xf32>
    %39 = vector.shape_cast %38 : vector<1x16x16x4xf32> to vector<16x16x4xf32>
    %40 = vector.shape_cast %39 : vector<16x16x4xf32> to vector<256x4xf32>
    %c20 = arith.constant 20 : index
    %c0_49 = arith.constant 0 : index
    %41 = vector.load %arg2[%c20, %c0_49] : memref<36x128xf32, #tpu.memory_space<vmem>>, vector<4x128xf32>
    %cst_50 = arith.constant dense<0.000000e+00> : vector<256x128xf32>
    %42 = tpu.matmul %40, %41, %cst_50 {dimension_numbers = #tpu.dot_dimension_numbers<[1], [0], [0], [1], [0, 0, 1, 1], [], []>} : vector<256x4xf32>, vector<4x128xf32>, vector<256x128xf32> -> vector<256x128xf32>
    %c0_51 = arith.constant 0 : index
    %c0_52 = arith.constant 0 : index
    %43 = vector.load %arg5[%c0_51, %c0_52] : memref<256x128xf32, #tpu.memory_space<vmem>>, vector<256x128xf32>
    %44 = arith.addf %43, %42 : vector<256x128xf32>
    %c0_53 = arith.constant 0 : index
    %c0_54 = arith.constant 0 : index
    %45 = vector.load %arg5[%c0_53, %c0_54] : memref<256x128xf32, #tpu.memory_space<vmem>>, vector<256x128xf32>
    tpu.vector_store %arg5[%c0_53, %c0_54], %44 {strides = array<i32>} : memref<256x128xf32, #tpu.memory_space<vmem>>, vector<256x128xf32>,
    %c0_55 = arith.constant 0 : index
    %c2_56 = arith.constant 2 : index
    %c0_57 = arith.constant 0 : index
    %c0_58 = arith.constant 0 : index
    %46 = vector.load %arg1[%c0_55, %c2_56, %c0_57, %c0_58] : memref<1x18x18x4xf32, #tpu.memory_space<vmem>>, vector<1x16x16x4xf32>
    %47 = vector.shape_cast %46 : vector<1x16x16x4xf32> to vector<16x16x4xf32>
    %48 = vector.shape_cast %47 : vector<16x16x4xf32> to vector<256x4xf32>
    %c24 = arith.constant 24 : index
    %c0_59 = arith.constant 0 : index
    %49 = vector.load %arg2[%c24, %c0_59] : memref<36x128xf32, #tpu.memory_space<vmem>>, vector<4x128xf32>
    %cst_60 = arith.constant dense<0.000000e+00> : vector<256x128xf32>
    %50 = tpu.matmul %48, %49, %cst_60 {dimension_numbers = #tpu.dot_dimension_numbers<[1], [0], [0], [1], [0, 0, 1, 1], [], []>} : vector<256x4xf32>, vector<4x128xf32>, vector<256x128xf32> -> vector<256x128xf32>
    %c0_61 = arith.constant 0 : index
    %c0_62 = arith.constant 0 : index
    %51 = vector.load %arg5[%c0_61, %c0_62] : memref<256x128xf32, #tpu.memory_space<vmem>>, vector<256x128xf32>
    %52 = arith.addf %51, %50 : vector<256x128xf32>
    %c0_63 = arith.constant 0 : index
    %c0_64 = arith.constant 0 : index
    %53 = vector.load %arg5[%c0_63, %c0_64] : memref<256x128xf32, #tpu.memory_space<vmem>>, vector<256x128xf32>
    tpu.vector_store %arg5[%c0_63, %c0_64], %52 {strides = array<i32>} : memref<256x128xf32, #tpu.memory_space<vmem>>, vector<256x128xf32>,
    %c0_65 = arith.constant 0 : index
    %c2_66 = arith.constant 2 : index
    %c1_67 = arith.constant 1 : index
    %c0_68 = arith.constant 0 : index
    %54 = vector.load %arg1[%c0_65, %c2_66, %c1_67, %c0_68] : memref<1x18x18x4xf32, #tpu.memory_space<vmem>>, vector<1x16x16x4xf32>
    %55 = vector.shape_cast %54 : vector<1x16x16x4xf32> to vector<16x16x4xf32>
    %56 = vector.shape_cast %55 : vector<16x16x4xf32> to vector<256x4xf32>
    %c28 = arith.constant 28 : index
    %c0_69 = arith.constant 0 : index
    %57 = vector.load %arg2[%c28, %c0_69] : memref<36x128xf32, #tpu.memory_space<vmem>>, vector<4x128xf32>
    %cst_70 = arith.constant dense<0.000000e+00> : vector<256x128xf32>
    %58 = tpu.matmul %56, %57, %cst_70 {dimension_numbers = #tpu.dot_dimension_numbers<[1], [0], [0], [1], [0, 0, 1, 1], [], []>} : vector<256x4xf32>, vector<4x128xf32>, vector<256x128xf32> -> vector<256x128xf32>
    %c0_71 = arith.constant 0 : index
    %c0_72 = arith.constant 0 : index
    %59 = vector.load %arg5[%c0_71, %c0_72] : memref<256x128xf32, #tpu.memory_space<vmem>>, vector<256x128xf32>
    %60 = arith.addf %59, %58 : vector<256x128xf32>
    %c0_73 = arith.constant 0 : index
    %c0_74 = arith.constant 0 : index
    %61 = vector.load %arg5[%c0_73, %c0_74] : memref<256x128xf32, #tpu.memory_space<vmem>>, vector<256x128xf32>
    tpu.vector_store %arg5[%c0_73, %c0_74], %60 {strides = array<i32>} : memref<256x128xf32, #tpu.memory_space<vmem>>, vector<256x128xf32>,
    %c0_75 = arith.constant 0 : index
    %c2_76 = arith.constant 2 : index
    %c2_77 = arith.constant 2 : index
    %c0_78 = arith.constant 0 : index
    %62 = vector.load %arg1[%c0_75, %c2_76, %c2_77, %c0_78] : memref<1x18x18x4xf32, #tpu.memory_space<vmem>>, vector<1x16x16x4xf32>
    %63 = vector.shape_cast %62 : vector<1x16x16x4xf32> to vector<16x16x4xf32>
    %64 = vector.shape_cast %63 : vector<16x16x4xf32> to vector<256x4xf32>
    %c32 = arith.constant 32 : index
    %c0_79 = arith.constant 0 : index
    %65 = vector.load %arg2[%c32, %c0_79] : memref<36x128xf32, #tpu.memory_space<vmem>>, vector<4x128xf32>
    %cst_80 = arith.constant dense<0.000000e+00> : vector<256x128xf32>
    %66 = tpu.matmul %64, %65, %cst_80 {dimension_numbers = #tpu.dot_dimension_numbers<[1], [0], [0], [1], [0, 0, 1, 1], [], []>} : vector<256x4xf32>, vector<4x128xf32>, vector<256x128xf32> -> vector<256x128xf32>
    %c0_81 = arith.constant 0 : index
    %c0_82 = arith.constant 0 : index
    %67 = vector.load %arg5[%c0_81, %c0_82] : memref<256x128xf32, #tpu.memory_space<vmem>>, vector<256x128xf32>
    %68 = arith.addf %67, %66 : vector<256x128xf32>
    %c0_83 = arith.constant 0 : index
    %c0_84 = arith.constant 0 : index
    %69 = vector.load %arg5[%c0_83, %c0_84] : memref<256x128xf32, #tpu.memory_space<vmem>>, vector<256x128xf32>
    tpu.vector_store %arg5[%c0_83, %c0_84], %68 {strides = array<i32>} : memref<256x128xf32, #tpu.memory_space<vmem>>, vector<256x128xf32>,
    %c0_85 = arith.constant 0 : index
    %c0_86 = arith.constant 0 : index
    %70 = vector.load %arg5[%c0_85, %c0_86] : memref<256x128xf32, #tpu.memory_space<vmem>>, vector<256x128xf32>
    %c0_87 = arith.constant 0 : index
    %c0_88 = arith.constant 0 : index
    %c0_89 = arith.constant 0 : index
    %71 = vector.load %arg3[%c0_87, %c0_88, %c0_89] : memref<1x256x128xf32, #tpu.memory_space<vmem>>, vector<1x256x128xf32>
    %72 = vector.shape_cast %71 : vector<1x256x128xf32> to vector<256x128xf32>
    %73 = vector.shape_cast %70 : vector<256x128xf32> to vector<1x256x128xf32>
    tpu.vector_store %arg3[%c0_87, %c0_88, %c0_89], %73 {strides = array<i32>} : memref<1x256x128xf32, #tpu.memory_space<vmem>>, vector<1x256x128xf32>,
    %cst_90 = arith.constant dense<0.000000e+00> : vector<128xf32>
    %74 = vector.multi_reduction <add>, %70, %cst_90 [0] : vector<256x128xf32> to vector<128xf32>
    %75 = vector.shape_cast %74 : vector<128xf32> to vector<1x128xf32>
    %c0_91 = arith.constant 0 : index
    %c0_92 = arith.constant 0 : index
    %c0_93 = arith.constant 0 : index
    %76 = vector.load %arg4[%c0_91, %c0_92, %c0_93] : memref<1x2x128xf32, #tpu.memory_space<vmem>>, vector<1x1x128xf32>
    %77 = vector.shape_cast %76 : vector<1x1x128xf32> to vector<1x128xf32>
    %78 = vector.shape_cast %75 : vector<1x128xf32> to vector<1x1x128xf32>
    tpu.vector_store %arg4[%c0_91, %c0_92, %c0_93], %78 {strides = array<i32>} : memref<1x2x128xf32, #tpu.memory_space<vmem>>, vector<1x1x128xf32>,
    %79 = arith.mulf %70, %70 : vector<256x128xf32>
    %cst_94 = arith.constant dense<0.000000e+00> : vector<128xf32>
    %80 = vector.multi_reduction <add>, %79, %cst_94 [0] : vector<256x128xf32> to vector<128xf32>
    %81 = vector.shape_cast %80 : vector<128xf32> to vector<1x128xf32>
    %c0_95 = arith.constant 0 : index
    %c1_96 = arith.constant 1 : index
    %c0_97 = arith.constant 0 : index
    %82 = vector.load %arg4[%c0_95, %c1_96, %c0_97] : memref<1x2x128xf32, #tpu.memory_space<vmem>>, vector<1x1x128xf32>
    %83 = vector.shape_cast %82 : vector<1x1x128xf32> to vector<1x128xf32>
    %84 = vector.shape_cast %81 : vector<1x128xf32> to vector<1x1x128xf32>
    tpu.vector_store %arg4[%c0_95, %c1_96, %c0_97], %84 {strides = array<i32>} : memref<1x2x128xf32, #tpu.memory_space<vmem>>, vector<1x1x128xf32>,
    return
  }
  func.func @transform_0(%arg0: i32) -> (i32, i32, i32, i32) {
    %c0_i32 = arith.constant 0 : i32
    %c0_i32_0 = arith.constant 0 : i32
    %c0_i32_1 = arith.constant 0 : i32
    %c0_i32_2 = arith.constant 0 : i32
    return %arg0, %c0_i32, %c0_i32_0, %c0_i32_1 : i32, i32, i32, i32
  }
  func.func @transform_1(%arg0: i32) -> (i32, i32) {
    %c0_i32 = arith.constant 0 : i32
    %c0_i32_0 = arith.constant 0 : i32
    %c0_i32_1 = arith.constant 0 : i32
    return %c0_i32, %c0_i32_0 : i32, i32
  }
  func.func @transform_2(%arg0: i32) -> (i32, i32, i32) {
    %c0_i32 = arith.constant 0 : i32
    %c0_i32_0 = arith.constant 0 : i32
    %c0_i32_1 = arith.constant 0 : i32
    return %arg0, %c0_i32, %c0_i32_0 : i32, i32, i32
  }
  func.func @transform_3(%arg0: i32) -> (i32, i32, i32) {
    %c0_i32 = arith.constant 0 : i32
    %c0_i32_0 = arith.constant 0 : i32
    %c0_i32_1 = arith.constant 0 : i32
    return %arg0, %c0_i32, %c0_i32_0 : i32, i32, i32
  }
}

</mosaic_0001>

<bundles_post_ra>
// kernel: basic_conv2d.3
= control target key start
LH: loop header
LB: loop body
LE: loop exit
PB: predicated region body
PF: predicated region fallthrough
CT: control target
= control target key end

     0   :  { %s415_s12 = smov 0   ;;  %s574_s0 = inlined_call_operand.vmem [shape: f32[512,128], index: 0, kind: input, shape index: {}]   ;;  %s575_s1 = inlined_call_operand.vmem [shape: f32[1,128], index: 1, kind: input, shape index: {}]   ;;  %s576_s2 = inlined_call_operand.vmem [shape: f32[1,128], index: 2, kind: input, shape index: {}]   ;;  %s577_s3 = inlined_call_operand.vmem [shape: f32[512,128], index: 3, kind: output, shape index: {}]  }
   0x1 LB: > { %s366_s13 = sadd.s32 4294967295, %s393_s12   ;;  %p370_p0 = scmp.ge.s32.totalorder %s393_s12, 1  ;;  %s393_s12 = sphi %s415_s12, %s13_s12  }
   0x2   : > { %p138_p1 = scmp.lt.s32.totalorder %s393_s12, 3 }
   0x4   : > { %p139_p2 = pnand %p370_p0, %p138_p1 }
   0x5   : > { %s371_s14 = sshll.u32 (!%p139_p2), %s366_s13, 5 }
   0x6   : > { %142 = sbr.rel (%p139_p2) target bundleno = 51 (0x33), region = 32  ;;  %p163_p3 = scmp.lt.s32.totalorder (!%p139_p2), %s371_s14, 63 }
   0xb   : > { %s579_s14 = smov (!%p163_p3, %s371_s14), 63  ;;  %v426_v0 = vld [vmem:[%s575_s1] ss:$0 sm:$0xff] }
   0xc   : > { %s372_s17 = sshll.u32 %s579_s14, 3  ;;  %v436_v1 = vld [vmem:[%s576_s2] ss:$0 sm:$0xff] }
   0xd   : > { %s431_s20 = scalar_lea.vmem %s574_s0, %s372_s17  ;;  %s450_s25 = scalar_lea.vmem %s577_s3, %s372_s17 }
   0xe   : > { %v174_v2 = vld [vmem:[%s431_s20] sm:$0xff]  ;;  %v175_v3 = vld [vmem:[%s431_s20 + $0x8] sm:$0xff]  ;;  %v176_v4 = vld [vmem:[%s431_s20 + $0x10] sm:$0xff] }
   0xf   : > { %v210_v5 = vmul.f32 %v426_v0, %v174_v2  ;;  %v211_v6 = vmul.f32 %v426_v0, %v175_v3  ;;  %v212_v7 = vmul.f32 %v426_v0, %v176_v4  ;;  %v177_v8 = vld [vmem:[%s431_s20 + $0x18] sm:$0xff]  ;;  %v178_v9 = vld [vmem:[%s431_s20 + $0x20] sm:$0xff]  ;;  %v179_v10 = vld [vmem:[%s431_s20 + $0x28] sm:$0xff] }
  0x10   : > { %v213_v11 = vmul.f32 %v426_v0, %v177_v8  ;;  %v214_v12 = vmul.f32 %v426_v0, %v178_v9  ;;  %v215_v13 = vmul.f32 %v426_v0, %v179_v10  ;;  %v180_v14 = vld [vmem:[%s431_s20 + $0x30] sm:$0xff]  ;;  %v181_v15 = vld [vmem:[%s431_s20 + $0x38] sm:$0xff]  ;;  %v182_v16 = vld [vmem:[%s431_s20 + $0x40] sm:$0xff] }
  0x11   : > { %v246_v17 = vadd.f32 %v436_v1, %v210_v5  ;;  %v247_v18 = vadd.f32 %v436_v1, %v211_v6  ;;  %v248_v19 = vadd.f32 %v436_v1, %v212_v7  ;;  %v216_v20 = vmul.f32 %v426_v0, %v180_v14  ;;  %v183_v21 = vld [vmem:[%s431_s20 + $0x48] sm:$0xff]  ;;  %v184_v24 = vld [vmem:[%s431_s20 + $0x50] sm:$0xff]  ;;  %v185_v27 = vld [vmem:[%s431_s20 + $0x58] sm:$0xff] }
  0x12   : > { %v249_v22 = vadd.f32 %v436_v1, %v213_v11  ;;  %v217_v23 = vmul.f32 %v426_v0, %v181_v15  ;;  %v250_v25 = vadd.f32 %v436_v1, %v214_v12  ;;  %v218_v26 = vmul.f32 %v426_v0, %v182_v16  ;;  %v186_v30 = vld [vmem:[%s431_s20 + $0x60] sm:$0xff]  ;;  %v187_v33 = vld [vmem:[%s431_s20 + $0x68] sm:$0xff]  ;;  %v188_v36 = vld [vmem:[%s431_s20 + $0x70] sm:$0xff] }
  0x13   : > { %278 = vst [vmem:[%s450_s25] sm:$0xff] %v246_v17  ;;  %v251_v28 = vadd.f32 %v436_v1, %v215_v13  ;;  %v219_v29 = vmul.f32 %v426_v0, %v183_v21  ;;  %v252_v31 = vadd.f32 %v436_v1, %v216_v20  ;;  %v220_v32 = vmul.f32 %v426_v0, %v184_v24  ;;  %v189_v39 = vld [vmem:[%s431_s20 + $0x78] sm:$0xff]  ;;  %v190_v42 = vld [vmem:[%s431_s20 + $0x80] sm:$0xff]  ;;  %v191_v45 = vld [vmem:[%s431_s20 + $0x88] sm:$0xff] }
  0x14   : > { %279 = vst [vmem:[%s450_s25 + $0x8] sm:$0xff] %v247_v18  ;;  %v253_v34 = vadd.f32 %v436_v1, %v217_v23  ;;  %v221_v35 = vmul.f32 %v426_v0, %v185_v27  ;;  %v254_v37 = vadd.f32 %v436_v1, %v218_v26  ;;  %v222_v38 = vmul.f32 %v426_v0, %v186_v30  ;;  %v192_v48 = vld [vmem:[%s431_s20 + $0x90] sm:$0xff]  ;;  %v193_v51 = vld [vmem:[%s431_s20 + $0x98] sm:$0xff]  ;;  %v194_v54 = vld [vmem:[%s431_s20 + $0xa0] sm:$0xff] }
  0x15   : > { %280 = vst [vmem:[%s450_s25 + $0x10] sm:$0xff] %v248_v19  ;;  %v255_v40 = vadd.f32 %v436_v1, %v219_v29  ;;  %v223_v41 = vmul.f32 %v426_v0, %v187_v33  ;;  %v256_v43 = vadd.f32 %v436_v1, %v220_v32  ;;  %v224_v44 = vmul.f32 %v426_v0, %v188_v36  ;;  %v195_v57 = vld [vmem:[%s431_s20 + $0xa8] sm:$0xff]  ;;  %v196_v60 = vld [vmem:[%s431_s20 + $0xb0] sm:$0xff]  ;;  %v197_v63 = vld [vmem:[%s431_s20 + $0xb8] sm:$0xff] }
  0x16   : > { %281 = vst [vmem:[%s450_s25 + $0x18] sm:$0xff] %v249_v22  ;;  %v257_v46 = vadd.f32 %v436_v1, %v221_v35  ;;  %v225_v47 = vmul.f32 %v426_v0, %v189_v39  ;;  %v258_v49 = vadd.f32 %v436_v1, %v222_v38  ;;  %v226_v50 = vmul.f32 %v426_v0, %v190_v42  ;;  %v198_v4 = vld [vmem:[%s431_s20 + $0xc0] sm:$0xff]  ;;  %v199_v7 = vld [vmem:[%s431_s20 + $0xc8] sm:$0xff]  ;;  %v200_v10 = vld [vmem:[%s431_s20 + $0xd0] sm:$0xff] }
  0x17   : > { %282 = vst [vmem:[%s450_s25 + $0x20] sm:$0xff] %v250_v25  ;;  %v259_v52 = vadd.f32 %v436_v1, %v223_v41  ;;  %v227_v53 = vmul.f32 %v426_v0, %v191_v45  ;;  %v260_v55 = vadd.f32 %v436_v1, %v224_v44  ;;  %v228_v56 = vmul.f32 %v426_v0, %v192_v48  ;;  %v201_v13 = vld [vmem:[%s431_s20 + $0xd8] sm:$0xff]  ;;  %v202_v16 = vld [vmem:[%s431_s20 + $0xe0] sm:$0xff]  ;;  %v203_v19 = vld [vmem:[%s431_s20 + $0xe8] sm:$0xff] }
  0x18   : > { %283 = vst [vmem:[%s450_s25 + $0x28] sm:$0xff] %v251_v28  ;;  %v261_v58 = vadd.f32 %v436_v1, %v225_v47  ;;  %v229_v59 = vmul.f32 %v426_v0, %v193_v51  ;;  %v262_v61 = vadd.f32 %v436_v1, %v226_v50  ;;  %v230_v62 = vmul.f32 %v426_v0, %v194_v54  ;;  %v204_v22 = vld [vmem:[%s431_s20 + $0xf0] sm:$0xff]  ;;  %v205_v25 = vld [vmem:[%s431_s20 + $0xf8] sm:$0xff] }
  0x19   : > { %284 = vst [vmem:[%s450_s25 + $0x30] sm:$0xff] %v252_v31  ;;  %v263_v2 = vadd.f32 %v436_v1, %v227_v53  ;;  %v231_v3 = vmul.f32 %v426_v0, %v195_v57  ;;  %v264_v5 = vadd.f32 %v436_v1, %v228_v56  ;;  %v232_v6 = vmul.f32 %v426_v0, %v196_v60 }
  0x1a   : > { %285 = vst [vmem:[%s450_s25 + $0x38] sm:$0xff] %v253_v34  ;;  %v265_v8 = vadd.f32 %v436_v1, %v229_v59  ;;  %v233_v9 = vmul.f32 %v426_v0, %v197_v63  ;;  %v266_v11 = vadd.f32 %v436_v1, %v230_v62  ;;  %v234_v12 = vmul.f32 %v426_v0, %v198_v4 }
  0x1b   : > { %286 = vst [vmem:[%s450_s25 + $0x40] sm:$0xff] %v254_v37  ;;  %v267_v14 = vadd.f32 %v436_v1, %v231_v3  ;;  %v235_v15 = vmul.f32 %v426_v0, %v199_v7  ;;  %v268_v17 = vadd.f32 %v436_v1, %v232_v6  ;;  %v236_v18 = vmul.f32 %v426_v0, %v200_v10 }
  0x1c   : > { %287 = vst [vmem:[%s450_s25 + $0x48] sm:$0xff] %v255_v40  ;;  %v269_v20 = vadd.f32 %v436_v1, %v233_v9  ;;  %v237_v21 = vmul.f32 %v426_v0, %v201_v13  ;;  %v270_v23 = vadd.f32 %v436_v1, %v234_v12  ;;  %v238_v24 = vmul.f32 %v426_v0, %v202_v16 }
  0x1d   : > { %288 = vst [vmem:[%s450_s25 + $0x50] sm:$0xff] %v256_v43  ;;  %v271_v26 = vadd.f32 %v436_v1, %v235_v15  ;;  %v239_v27 = vmul.f32 %v426_v0, %v203_v19  ;;  %v272_v28 = vadd.f32 %v436_v1, %v236_v18  ;;  %v240_v29 = vmul.f32 %v426_v0, %v204_v22 }
  0x1e   : > { %289 = vst [vmem:[%s450_s25 + $0x58] sm:$0xff] %v257_v46  ;;  %v273_v30 = vadd.f32 %v436_v1, %v237_v21  ;;  %v241_v31 = vmul.f32 %v426_v0, %v205_v25  ;;  %v274_v32 = vadd.f32 %v436_v1, %v238_v24 }
  0x1f   : > { %290 = vst [vmem:[%s450_s25 + $0x60] sm:$0xff] %v258_v49  ;;  %v275_v33 = vadd.f32 %v436_v1, %v239_v27  ;;  %v276_v34 = vadd.f32 %v436_v1, %v240_v29 }
  0x20   : > { %291 = vst [vmem:[%s450_s25 + $0x68] sm:$0xff] %v259_v52  ;;  %v277_v35 = vadd.f32 %v436_v1, %v241_v31 }
  0x21   : > { %292 = vst [vmem:[%s450_s25 + $0x70] sm:$0xff] %v260_v55 }
  0x22   : > { %293 = vst [vmem:[%s450_s25 + $0x78] sm:$0xff] %v261_v58 }
  0x23   : > { %294 = vst [vmem:[%s450_s25 + $0x80] sm:$0xff] %v262_v61 }
  0x24   : > { %295 = vst [vmem:[%s450_s25 + $0x88] sm:$0xff] %v263_v2 }
  0x25   : > { %296 = vst [vmem:[%s450_s25 + $0x90] sm:$0xff] %v264_v5 }
  0x26   : > { %297 = vst [vmem:[%s450_s25 + $0x98] sm:$0xff] %v265_v8 }
  0x27   : > { %298 = vst [vmem:[%s450_s25 + $0xa0] sm:$0xff] %v266_v11 }
  0x28   : > { %299 = vst [vmem:[%s450_s25 + $0xa8] sm:$0xff] %v267_v14 }
  0x29   : > { %300 = vst [vmem:[%s450_s25 + $0xb0] sm:$0xff] %v268_v17 }
  0x2a   : > { %301 = vst [vmem:[%s450_s25 + $0xb8] sm:$0xff] %v269_v20 }
  0x2b   : > { %302 = vst [vmem:[%s450_s25 + $0xc0] sm:$0xff] %v270_v23 }
  0x2c   : > { %303 = vst [vmem:[%s450_s25 + $0xc8] sm:$0xff] %v271_v26 }
  0x2d   : > { %304 = vst [vmem:[%s450_s25 + $0xd0] sm:$0xff] %v272_v28 }
  0x2e   : > { %305 = vst [vmem:[%s450_s25 + $0xd8] sm:$0xff] %v273_v30 }
  0x2f   : > { %306 = vst [vmem:[%s450_s25 + $0xe0] sm:$0xff] %v274_v32 }
  0x30   : > { %307 = vst [vmem:[%s450_s25 + $0xe8] sm:$0xff] %v275_v33 }
  0x31   : > { %308 = vst [vmem:[%s450_s25 + $0xf0] sm:$0xff] %v276_v34 }
  0x32   : > { %309 = vst [vmem:[%s450_s25 + $0xf8] sm:$0xff] %v277_v35 }
  0x33 PF: > { %s13_s12 = sadd.s32 1, %s393_s12  }
  0x34   : > { %p10_p4 = scmp.ge.s32.totalorder %s13_s12, 4  }
  0x36   :  { %12 = sbr.rel (!%p10_p4) target bundleno = 1 (0x1), region = 62 }

// kernel: basic_conv2d.2
= control target key start
LH: loop header
LB: loop body
LE: loop exit
PB: predicated region body
PF: predicated region fallthrough
CT: control target
= control target key end

     0   :  { %s3990_s12 = smov 0   ;;  %s5109_s0 = inlined_call_operand.vmem [shape: f32[2,18,18,4], index: 0, kind: input, shape index: {}]   ;;  %s5110_s1 = inlined_call_operand.vmem [shape: f32[36,128], index: 1, kind: input, shape index: {}]   ;;  %s5111_s2 = inlined_call_operand.vmem [shape: f32[2,256,128], index: 2, kind: output, shape index: {0}]   ;;  %s5112_s3 = inlined_call_operand.vmem [shape: f32[2,2,128], index: 3, kind: output, shape index: {1}]  }
   0x1 LB: > { %s3449_s13 = sadd.s32 4294967295, %s3968_s12   ;;  %p3453_p0 = scmp.ge.s32.totalorder %s3968_s12, 1  ;;  %s3968_s12 = sphi %s3990_s12, %s14_s12  }
   0x2   : > { %p140_p1 = scmp.lt.s32.totalorder %s3968_s12, 3 }
   0x4   : > { %p141_p2 = pnand %p3453_p0, %p140_p1 }
   0x6   : > { %144 = sbr.rel (%p141_p2) target bundleno = 742 (0x2e6), region = 28 }
   0xb   : > { %v214_v0 = vld [vmem:[%s5110_s1] sm:$0xf]  ;;  %vm312_vm0 = vcmask 1043456   ;;  %p168_p3 = scmp.lt.s32.totalorder %s3449_s13, 1  ;;  %v834_v1 = vld [vmem:[%s5110_s1 + $0x8] sm:$0xf] }
   0xc   : > { %3950 = vmatpush.msk.msra.mxu1 %vm312_vm0, %v214_v0  ;;  %3951 = vmatpush.msk.msra.mxu2 %vm312_vm0, %v214_v0  ;;  %v1176_v2 = vld [vmem:[%s5110_s1 + $0xc] sm:$0xf]  ;;  %v493_v3 = vld [vmem:[%s5110_s1 + $0x4] sm:$0xf]  ;;  %v1517_v4 = vld [vmem:[%s5110_s1 + $0x10] sm:$0xf] }
   0xd   : > { %s5231_s13 = smov (!%p168_p3, %s3449_s13), 1  ;;  %3952 = vmatpush.msk.msra.mxu3 %vm312_vm0, %v214_v0  ;;  %3458 = vmatpush.msk.msra.mxu0 %vm312_vm0, %v214_v0  ;;  %vm215_vm1 = vcmask 31744   ;;  %v2200_v25 = vld [vmem:[%s5110_s1 + $0x18] sm:$0xf]  ;;  %v2541_v26 = vld [vmem:[%s5110_s1 + $0x1c] sm:$0xf] }
   0xe   : > { %3524 = vmatpush.msk.msrb.mxu2 %vm312_vm0, %v834_v1  ;;  %3491 = vmatpush.msk.msrb.mxu1 %vm312_vm0, %v493_v3  ;;  %s3953_s24 = smul.u32 432, %s5231_s13  ;;  %v1858_v27 = vld [vmem:[%s5110_s1 + $0x14] sm:$0xf]  ;;  %v2882_v32 = vld [vmem:[%s5110_s1 + $0x20] sm:$0xf]  ;;  %s3949_s9 = sshll.u32 %s5231_s13, 8 }
   0xf   : > { %3589 = vmatpush.msk.msrb.mxu3 %vm312_vm0, %v1176_v2  ;;  %3654 = vmatpush.msk.msrb.mxu0 %vm312_vm0, %v1517_v4  ;;  %s4921_s14 = scalar_lea.vmem %s5111_s2, %s3949_s9  ;;  %s3457_s15 = sshll.u32 %s5231_s13, 1 }
  0x10   : > { %s4027_s27 = scalar_lea.vmem %s5109_s0, %s3953_s24  ;;  %s181_s18 = scalar_lea.vmem %s5112_s3, %s3457_s15 }
  0x11   : > { %v4030_v5 = vld [vmem:[%s4027_s27 + $0x60] sm:$0xff]  ;;  %v4047_v9 = vld [vmem:[%s4027_s27 + $0x68] sm:$0xff]  ;;  %v4064_v13 = vld [vmem:[%s4027_s27 + $0x78] sm:$0xff] }
  0x12   : > { %v4033_v6 = vld [vmem:[%s4027_s27 + $0xc0] sm:$0xff]  ;;  %3467 = vmatmul.msk.f32.vlgmr.msra.gmra.mxu1 %vm215_vm1, %v4030_v5  ;;  %v4050_v10 = vld [vmem:[%s4027_s27 + $0xc8] sm:$0xff]  ;;  %v4067_v14 = vld [vmem:[%s4027_s27 + $0xd8] sm:$0xff] }
  0x13   : > { %v4036_v7 = vld [vmem:[%s4027_s27 + $0x120] sm:$0xff]  ;;  %3475 = vmatmul.msk.f32.vlgmr.msra.gmra.mxu2 %vm215_vm1, %v4033_v6  ;;  %v4053_v11 = vld [vmem:[%s4027_s27 + $0x128] sm:$0xff]  ;;  %v4070_v15 = vld [vmem:[%s4027_s27 + $0x138] sm:$0xff]  ;;  %3719 = vmatpush.msk.msra.mxu1 %vm312_vm0, %v1858_v27 }
  0x14   : > { %v182_v8 = vld [vmem:[%s4027_s27] sm:$0xff]  ;;  %3483 = vmatmul.msk.f32.vlgmr.msra.gmra.mxu3 %vm215_vm1, %v4036_v7  ;;  %v183_v12 = vld [vmem:[%s4027_s27 + $0x8] sm:$0xff]  ;;  %v184_v16 = vld [vmem:[%s4027_s27 + $0x18] sm:$0xff]  ;;  %3784 = vmatpush.msk.msra.mxu2 %vm312_vm0, %v2200_v25 }
  0x15   : > { %3459 = vmatmul.msk.f32.vlgmr.msra.gmra.mxu0 %vm215_vm1, %v182_v8  ;;  %v4081_v17 = vld [vmem:[%s4027_s27 + $0x80] sm:$0xff]  ;;  %v4098_v21 = vld [vmem:[%s4027_s27 + $0x90] sm:$0xff]  ;;  %3849 = vmatpush.msk.msra.mxu3 %vm312_vm0, %v2541_v26  ;;  %v4130_v28 = vld [vmem:[%s4027_s27 + $0x98] sm:$0xff] }
  0x16   : > { %v4084_v18 = vld [vmem:[%s4027_s27 + $0xe0] sm:$0xff]  ;;  %v4101_v22 = vld [vmem:[%s4027_s27 + $0xf0] sm:$0xff]  ;;  %v4133_v29 = vld [vmem:[%s4027_s27 + $0xf8] sm:$0xff]  ;;  %3914 = vmatpush.msk.msra.mxu0 %vm312_vm0, %v2882_v32 }
  0x17   : > { %v4087_v19 = vld [vmem:[%s4027_s27 + $0x140] sm:$0xff]  ;;  %v4104_v23 = vld [vmem:[%s4027_s27 + $0x150] sm:$0xff]  ;;  %v4136_v30 = vld [vmem:[%s4027_s27 + $0x158] sm:$0xff] }
  0x18   : > { %v185_v20 = vld [vmem:[%s4027_s27 + $0x20] sm:$0xff]  ;;  %v4107_v24 = vld [vmem:[%s4027_s27 + $0x30] sm:$0xff]  ;;  %v4139_v31 = vld [vmem:[%s4027_s27 + $0x38] sm:$0xff] }
  0x19   : > { %v4154_v33 = vld [vmem:[%s4027_s27 + $0xa8] sm:$0xff]  ;;  %v4174_v37 = vld [vmem:[%s4027_s27 + $0xb0] sm:$0xff]  ;;  %v3622_v43 = vld [vmem:[%s4027_s27 + $0x19] sm:$0xff] }
  0x1a   : > { %3468 = vmatmul.msk.f32.gmra.mxu1 %vm215_vm1, %v4047_v9  ;;  %v4157_v34 = vld [vmem:[%s4027_s27 + $0x108] sm:$0xff]  ;;  %v4177_v38 = vld [vmem:[%s4027_s27 + $0x110] sm:$0xff]  ;;  %v4208_v47 = vld [vmem:[%s4027_s27 + $0x1a] sm:$0xff] }
  0x1b   : > { %3476 = vmatmul.msk.f32.gmra.mxu2 %vm215_vm1, %v4050_v10  ;;  %v4160_v35 = vld [vmem:[%s4027_s27 + $0x168] sm:$0xff]  ;;  %v4180_v39 = vld [vmem:[%s4027_s27 + $0x170] sm:$0xff]  ;;  %v4224_v50 = vld [vmem:[%s4027_s27 + $0x39] sm:$0xff] }
  0x1c   : > { %3484 = vmatmul.msk.f32.gmra.mxu3 %vm215_vm1, %v4053_v11  ;;  %v4163_v36 = vld [vmem:[%s4027_s27 + $0x48] sm:$0xff]  ;;  %v4183_v40 = vld [vmem:[%s4027_s27 + $0x50] sm:$0xff]  ;;  %v4248_v53 = vld [vmem:[%s4027_s27 + $0x3a] sm:$0xff] }
  0x1d   : > { %3460 = vmatmul.msk.f32.gmra.mxu0 %vm215_vm1, %v183_v12  ;;  %v461_v41 = vld [vmem:[%s4027_s27 + $0x1] sm:$0xff]  ;;  %v462_v44 = vld [vmem:[%s4027_s27 + $0x9] sm:$0xff]  ;;  %v4211_v48 = vld [vmem:[%s4027_s27 + $0x31] sm:$0xff] }
  0x1e   : > { %v802_v42 = vld [vmem:[%s4027_s27 + $0x2] sm:$0xff]  ;;  %v803_v45 = vld [vmem:[%s4027_s27 + $0xa] sm:$0xff]  ;;  %v4234_v51 = vld [vmem:[%s4027_s27 + $0x32] sm:$0xff] }
  0x1f   : > { %v3623_v46 = vld [vmem:[%s4027_s27 + $0x21] sm:$0xff]  ;;  %v4237_v52 = vld [vmem:[%s4027_s27 + $0x49] sm:$0xff]  ;;  %v4251_v54 = vld [vmem:[%s4027_s27 + $0x51] sm:$0xff] }
  0x20   : > { %v4221_v49 = vld [vmem:[%s4027_s27 + $0x22] sm:$0xff]  ;;  %v4262_v55 = vld [vmem:[%s4027_s27 + $0x4a] sm:$0xff]  ;;  %v4276_v57 = vld [vmem:[%s4027_s27 + $0x52] sm:$0xff] }
  0x21   : > { %v4265_v56 = vld [vmem:[%s4027_s27 + $0x61] sm:$0xff]  ;;  %v4279_v58 = vld [vmem:[%s4027_s27 + $0x69] sm:$0xff]  ;;  %v4297_v62 = vld [vmem:[%s4027_s27 + $0x79] sm:$0xff] }
  0x22   : > { %3469 = vmatmul.msk.f32.gmra.mxu1 %vm215_vm1, %v4064_v13  ;;  %5140 = vst [vmem:[#allocation3_spill] sm:$0xff] %v4279_v58  ;;  %v4292_v60 = vld [vmem:[%s4027_s27 + $0x62] sm:$0xff]  ;;  %v4314_v2 = vld [vmem:[%s4027_s27 + $0x6a] sm:$0xff]  ;;  %v4336_v12 = vld [vmem:[%s4027_s27 + $0x7a] sm:$0xff] }
  0x23   : > { %3477 = vmatmul.msk.f32.gmra.mxu2 %vm215_vm1, %v4067_v14  ;;  %5141 = vst [vmem:[#allocation4_spill] sm:$0xff] %v4297_v62  ;;  %v4319_v4 = vld [vmem:[%s4027_s27 + $0x81] sm:$0xff]  ;;  %v4363_v32 = vld [vmem:[%s4027_s27 + $0x99] sm:$0xff] }
  0x24   : > { %3485 = vmatmul.msk.f32.gmra.mxu3 %vm215_vm1, %v4070_v15  ;;  %5143 = vst [vmem:[#allocation6_spill] sm:$0xff] %v4314_v2  ;;  %v4358_v26 = vld [vmem:[%s4027_s27 + $0x82] sm:$0xff] }
  0x25   : > { %3461 = vmatmul.msk.f32.gmra.mxu0 %vm215_vm1, %v184_v16  ;;  %5144 = vst [vmem:[#allocation7_spill] sm:$0xff] %v4319_v4 }
  0x26   : > { %5146 = vst [vmem:[#allocation9_spill] sm:$0xff] %v4336_v12 }
  0x27   : > { %5149 = vst [vmem:[#allocation12_spill] sm:$0xff] %v4358_v26 }
  0x28   : > { %5150 = vst [vmem:[#allocation13_spill] sm:$0xff] %v4363_v32 }
  0x2a   : > { %3470 = vmatmul.msk.f32.gmra.mxu1 %vm215_vm1, %v4081_v17 }
  0x2b   : > { %3478 = vmatmul.msk.f32.gmra.mxu2 %vm215_vm1, %v4084_v18 }
  0x2c   : > { %3486 = vmatmul.msk.f32.gmra.mxu3 %vm215_vm1, %v4087_v19 }
  0x2d   : > { %3462 = vmatmul.msk.f32.gmra.mxu0 %vm215_vm1, %v185_v20 }
  0x32   : > { %3471 = vmatmul.msk.f32.gmra.mxu1 %vm215_vm1, %v4098_v21 }
  0x33   : > { %3479 = vmatmul.msk.f32.gmra.mxu2 %vm215_vm1, %v4101_v22 }
  0x34   : > { %3487 = vmatmul.msk.f32.gmra.mxu3 %vm215_vm1, %v4104_v23 }
  0x35   : > { %3463 = vmatmul.msk.f32.gmra.mxu0 %vm215_vm1, %v4107_v24 }
  0x3a   : > { %3472 = vmatmul.msk.f32.gmra.mxu1 %vm215_vm1, %v4130_v28 }
  0x3b   : > { %3480 = vmatmul.msk.f32.gmra.mxu2 %vm215_vm1, %v4133_v29 }
  0x3c   : > { %3488 = vmatmul.msk.f32.gmra.mxu3 %vm215_vm1, %v4136_v30 }
  0x3d   : > { %3464 = vmatmul.msk.f32.gmra.mxu0 %vm215_vm1, %v4139_v31 }
  0x42   : > { %3473 = vmatmul.msk.f32.gmra.mxu1 %vm215_vm1, %v4154_v33 }
  0x43   : > { %3481 = vmatmul.msk.f32.gmra.mxu2 %vm215_vm1, %v4157_v34 }
  0x44   : > { %3489 = vmatmul.msk.f32.gmra.mxu3 %vm215_vm1, %v4160_v35 }
  0x45   : > { %3465 = vmatmul.msk.f32.gmra.mxu0 %vm215_vm1, %v4163_v36 }
  0x4a   : > { %3474 = vmatmul.msk.f32.gmra.mxu1 %vm215_vm1, %v4174_v37 }
  0x4b   : > { %3482 = vmatmul.msk.f32.gmra.mxu2 %vm215_vm1, %v4177_v38 }
  0x4c   : > { %3490 = vmatmul.msk.f32.gmra.mxu3 %vm215_vm1, %v4180_v39 }
  0x4d   : > { %3466 = vmatmul.msk.f32.gmra.mxu0 %vm215_vm1, %v4183_v40 }
  0x52   : > { %3492 = vmatmul.msk.f32.vlgmr.msrb.gmra.mxu1 %vm215_vm1, %v461_v41 }
  0x53   : > { %3525 = vmatmul.msk.f32.vlgmr.msrb.gmra.mxu2 %vm215_vm1, %v802_v42 }
  0x54   : > { %3590 = vmatmul.msk.f32.vlgmr.msrb.gmra.mxu3 %vm215_vm1, %v184_v16  ;;  %v4341_v16 = vld [vmem:[%s4027_s27 + $0x91] sm:$0xff] }
  0x55   : > { %3655 = vmatmul.msk.f32.vlgmr.msrb.gmra.mxu0 %vm215_vm1, %v3622_v43  ;;  %5147 = vst [vmem:[#allocation10_spill] sm:$0xff] %v4341_v16 }
  0x5a   : > { %3493 = vmatmul.msk.f32.gmra.mxu1 %vm215_vm1, %v462_v44 }
  0x5b   : > { %3526 = vmatmul.msk.f32.gmra.mxu2 %vm215_vm1, %v803_v45  ;;  %v4385_v45 = vld [vmem:[%s4027_s27 + $0xa9] sm:$0xff] }
  0x5c   : > { %3591 = vmatmul.msk.f32.gmra.mxu3 %vm215_vm1, %v185_v20  ;;  %5153 = vst [vmem:[#allocation16_spill] sm:$0xff] %v4385_v45 }
  0x5d   : > { %3656 = vmatmul.msk.f32.gmra.mxu0 %vm215_vm1, %v3623_v46 }
  0x62   : > { %3494 = vmatmul.msk.f32.gmra.mxu1 %vm215_vm1, %v3622_v43  ;;  %v4380_v43 = vld [vmem:[%s4027_s27 + $0x92] sm:$0xff] }
  0x63   : > { %3527 = vmatmul.msk.f32.gmra.mxu2 %vm215_vm1, %v4208_v47  ;;  %5152 = vst [vmem:[#allocation15_spill] sm:$0xff] %v4380_v43 }
  0x64   : > { %3592 = vmatmul.msk.f32.gmra.mxu3 %vm215_vm1, %v4107_v24 }
  0x65   : > { %3657 = vmatmul.msk.f32.gmra.mxu0 %vm215_vm1, %v4211_v48 }
  0x6a   : > { %3495 = vmatmul.msk.f32.gmra.mxu1 %vm215_vm1, %v3623_v46 }
  0x6b   : > { %3528 = vmatmul.msk.f32.gmra.mxu2 %vm215_vm1, %v4221_v49 }
  0x6c   : > { %3593 = vmatmul.msk.f32.gmra.mxu3 %vm215_vm1, %v4139_v31 }
  0x6d   : > { %3658 = vmatmul.msk.f32.gmra.mxu0 %vm215_vm1, %v4224_v50 }
  0x72   : > { %3496 = vmatmul.msk.f32.gmra.mxu1 %vm215_vm1, %v4211_v48 }
  0x73   : > { %3529 = vmatmul.msk.f32.gmra.mxu2 %vm215_vm1, %v4234_v51 }
  0x74   : > { %3594 = vmatmul.msk.f32.gmra.mxu3 %vm215_vm1, %v4163_v36 }
  0x75   : > { %3659 = vmatmul.msk.f32.gmra.mxu0 %vm215_vm1, %v4237_v52 }
  0x7a   : > { %3497 = vmatmul.msk.f32.gmra.mxu1 %vm215_vm1, %v4224_v50 }
  0x7b   : > { %3530 = vmatmul.msk.f32.gmra.mxu2 %vm215_vm1, %v4248_v53 }
  0x7c   : > { %3595 = vmatmul.msk.f32.gmra.mxu3 %vm215_vm1, %v4183_v40 }
  0x7d   : > { %3660 = vmatmul.msk.f32.gmra.mxu0 %vm215_vm1, %v4251_v54 }
  0x82   : > { %3498 = vmatmul.msk.f32.gmra.mxu1 %vm215_vm1, %v4237_v52 }
  0x83   : > { %3531 = vmatmul.msk.f32.gmra.mxu2 %vm215_vm1, %v4262_v55 }
  0x84   : > { %3596 = vmatmul.msk.f32.gmra.mxu3 %vm215_vm1, %v4030_v5 }
  0x85   : > { %3661 = vmatmul.msk.f32.gmra.mxu0 %vm215_vm1, %v4265_v56 }
  0x8a   : > { %3499 = vmatmul.msk.f32.gmra.mxu1 %vm215_vm1, %v4251_v54 }
  0x8b   : > { %3532 = vmatmul.msk.f32.gmra.mxu2 %vm215_vm1, %v4276_v57 }
  0x8c   : > { %3597 = vmatmul.msk.f32.gmra.mxu3 %vm215_vm1, %v4047_v9 }
  0x8d   : > { %3662 = vmatmul.msk.f32.gmra.mxu0 %vm215_vm1, %v4279_v58 }
  0x8f   : > { %v4289_v59 = vpop.f32.mrf.mxu1 }
  0x92   : > { %v4294_v61 = vpop.f32.mrf.mxu0  ;;  %3500 = vmatmul.msk.f32.gmra.mxu1 %vm215_vm1, %v4265_v56 }
  0x93   : > { %3533 = vmatmul.msk.f32.gmra.mxu2 %vm215_vm1, %v4292_v60 }
  0x94   : > { %3598 = vmatmul.msk.f32.gmra.mxu3 %vm215_vm1, %v4064_v13 }
  0x95   : > { %3663 = vmatmul.msk.f32.gmra.mxu0 %vm215_vm1, %v4297_v62 }
  0x96   : > { %v4307_v63 = vpop.f32.mrf.mxu2 }
  0x97   : > { %v4309_v0 = vpop.f32.mrf.mxu3  ;;  %v4311_v1 = vpop.f32.mrf.mxu1 }
  0x98   : > { %5142 = vst [vmem:[#allocation5_spill] sm:$0xff] %v4309_v0  ;;  %v4407_v0 = vld [vmem:[%s4027_s27 + $0xb1] sm:$0xff] }
  0x99   : > { %5157 = vst [vmem:[#allocation20_spill] sm:$0xff] %v4407_v0 }
  0x9a   : > { %v4316_v3 = vpop.f32.mrf.mxu0  ;;  %3501 = vmatmul.msk.f32.gmra.mxu1 %vm215_vm1, %v4279_v58 }
  0x9b   : > { %3534 = vmatmul.msk.f32.gmra.mxu2 %vm215_vm1, %v4314_v2  ;;  %v4481_v2 = vld [vmem:[%s4027_s27 + $0xca] sm:$0xff] }
  0x9c   : > { %3599 = vmatmul.msk.f32.gmra.mxu3 %vm215_vm1, %v4081_v17 }
  0x9d   : > { %3664 = vmatmul.msk.f32.gmra.mxu0 %vm215_vm1, %v4319_v4 }
  0x9e   : > { %v4329_v5 = vpop.f32.mrf.mxu2 }
  0x9f   : > { %v4331_v8 = vpop.f32.mrf.mxu3  ;;  %v4333_v9 = vpop.f32.mrf.mxu1 }
  0xa0   : > { %5145 = vst [vmem:[#allocation8_spill] sm:$0xff] %v4331_v8 }
  0xa2   : > { %v4338_v13 = vpop.f32.mrf.mxu0  ;;  %3502 = vmatmul.msk.f32.gmra.mxu1 %vm215_vm1, %v4297_v62 }
  0xa3   : > { %3535 = vmatmul.msk.f32.gmra.mxu2 %vm215_vm1, %v4336_v12  ;;  %v4451_v12 = vld [vmem:[%s4027_s27 + $0xc9] sm:$0xff] }
  0xa4   : > { %3600 = vmatmul.msk.f32.gmra.mxu3 %vm215_vm1, %v4098_v21 }
  0xa5   : > { %3665 = vmatmul.msk.f32.gmra.mxu0 %vm215_vm1, %v4341_v16 }
  0xa6   : > { %v4351_v17 = vpop.f32.mrf.mxu2 }
  0xa7   : > { %v4353_v20 = vpop.f32.mrf.mxu3  ;;  %v4355_v25 = vpop.f32.mrf.mxu1 }
  0xa8   : > { %5148 = vst [vmem:[#allocation11_spill] sm:$0xff] %v4353_v20  ;;  %v4402_v20 = vld [vmem:[%s4027_s27 + $0x9a] sm:$0xff] }
  0xa9   : > { %5156 = vst [vmem:[#allocation19_spill] sm:$0xff] %v4402_v20 }
  0xaa   : > { %v4360_v27 = vpop.f32.mrf.mxu0  ;;  %3503 = vmatmul.msk.f32.gmra.mxu1 %vm215_vm1, %v4319_v4  ;;  %v4446_v4 = vld [vmem:[%s4027_s27 + $0xb2] sm:$0xff] }
  0xab   : > { %3536 = vmatmul.msk.f32.gmra.mxu2 %vm215_vm1, %v4358_v26  ;;  %v4429_v26 = vld [vmem:[%s4027_s27 + $0xc1] sm:$0xff]  ;;  %5164 = vst [vmem:[#allocation27_spill] sm:$0xff] %v4446_v4 }
  0xac   : > { %3601 = vmatmul.msk.f32.gmra.mxu3 %vm215_vm1, %v4130_v28  ;;  %5161 = vst [vmem:[#allocation24_spill] sm:$0xff] %v4429_v26 }
  0xad   : > { %3666 = vmatmul.msk.f32.gmra.mxu0 %vm215_vm1, %v4363_v32 }
  0xae   : > { %v4373_v21 = vpop.f32.mrf.mxu2 }
  0xaf   : > { %v4375_v41 = vpop.f32.mrf.mxu3  ;;  %v4377_v42 = vpop.f32.mrf.mxu1 }
  0xb0   : > { %5151 = vst [vmem:[#allocation14_spill] sm:$0xff] %v4375_v41 }
  0xb2   : > { %v4382_v44 = vpop.f32.mrf.mxu0  ;;  %3504 = vmatmul.msk.f32.gmra.mxu1 %vm215_vm1, %v4341_v16  ;;  %v4424_v16 = vld [vmem:[%s4027_s27 + $0xaa] sm:$0xff] }
  0xb3   : > { %3537 = vmatmul.msk.f32.gmra.mxu2 %vm215_vm1, %v4380_v43  ;;  %5160 = vst [vmem:[#allocation23_spill] sm:$0xff] %v4424_v16 }
  0xb4   : > { %3602 = vmatmul.msk.f32.gmra.mxu3 %vm215_vm1, %v4154_v33 }
  0xb5   : > { %3667 = vmatmul.msk.f32.gmra.mxu0 %vm215_vm1, %v4385_v45 }
  0xb6   : > { %v4395_v28 = vpop.f32.mrf.mxu2 }
  0xb7   : > { %5154 = vst [vmem:[#allocation17_spill] sm:$0xff] %v4395_v28  ;;  %v4397_v46 = vpop.f32.mrf.mxu3  ;;  %v4399_v41 = vpop.f32.mrf.mxu1  ;;  %v4484_v28 = vld [vmem:[%s4027_s27 + $0xe1] sm:$0xff] }
  0xb8   : > { %5155 = vst [vmem:[#allocation18_spill] sm:$0xff] %v4397_v46 }
  0xba   : > { %v4404_v8 = vpop.f32.mrf.mxu0  ;;  %3505 = vmatmul.msk.f32.gmra.mxu1 %vm215_vm1, %v4363_v32 }
  0xbb   : > { %3538 = vmatmul.msk.f32.gmra.mxu2 %vm215_vm1, %v4402_v20 }
  0xbc   : > { %3603 = vmatmul.msk.f32.gmra.mxu3 %vm215_vm1, %v4174_v37 }
  0xbd   : > { %3668 = vmatmul.msk.f32.gmra.mxu0 %vm215_vm1, %v4407_v0 }
  0xbe   : > { %v4417_v33 = vpop.f32.mrf.mxu2 }
  0xbf   : > { %5158 = vst [vmem:[#allocation21_spill] sm:$0xff] %v4417_v33  ;;  %v4419_v46 = vpop.f32.mrf.mxu3  ;;  %v4421_v43 = vpop.f32.mrf.mxu1 }
  0xc0   : > { %5159 = vst [vmem:[#allocation22_spill] sm:$0xff] %v4419_v46 }
  0xc2   : > { %v4426_v32 = vpop.f32.mrf.mxu0  ;;  %3506 = vmatmul.msk.f32.gmra.mxu1 %vm215_vm1, %v4385_v45 }
  0xc3   : > { %3539 = vmatmul.msk.f32.gmra.mxu2 %vm215_vm1, %v4424_v16 }
  0xc4   : > { %3604 = vmatmul.msk.f32.gmra.mxu3 %vm215_vm1, %v4033_v6 }
  0xc5   : > { %3669 = vmatmul.msk.f32.gmra.mxu0 %vm215_vm1, %v4429_v26 }
  0xc6   : > { %v4439_v37 = vpop.f32.mrf.mxu2 }
  0xc7   : > { %5162 = vst [vmem:[#allocation25_spill] sm:$0xff] %v4439_v37  ;;  %v4441_v46 = vpop.f32.mrf.mxu3  ;;  %v4443_v20 = vpop.f32.mrf.mxu1  ;;  %v4466_v37 = vld [vmem:[%s4027_s27 + $0xc2] sm:$0xff] }
  0xc8   : > { %5163 = vst [vmem:[#allocation26_spill] sm:$0xff] %v4441_v46 }
  0xc9   : > { %5167 = vst [vmem:[#allocation30_spill] sm:$0xff] %v4466_v37 }
  0xca   : > { %v4448_v45 = vpop.f32.mrf.mxu0  ;;  %3507 = vmatmul.msk.f32.gmra.mxu1 %vm215_vm1, %v4407_v0  ;;  %v4469_v0 = vld [vmem:[%s4027_s27 + $0xd9] sm:$0xff] }
  0xcb   : > { %3540 = vmatmul.msk.f32.gmra.mxu2 %vm215_vm1, %v4446_v4 }
  0xcc   : > { %3605 = vmatmul.msk.f32.gmra.mxu3 %vm215_vm1, %v4050_v10 }
  0xcd   : > { %3670 = vmatmul.msk.f32.gmra.mxu0 %vm215_vm1, %v4451_v12 }
  0xce   : > { %v4461_v6 = vpop.f32.mrf.mxu2 }
  0xcf   : > { %5165 = vst [vmem:[#allocation28_spill] sm:$0xff] %v4461_v6  ;;  %v4463_v46 = vpop.f32.mrf.mxu3  ;;  %v610_v16 = vpop.f32.mrf.mxu1 }
  0xd0   : > { %5166 = vst [vmem:[#allocation29_spill] sm:$0xff] %v4463_v46  ;;  %v738_v10 = vadd.f32 %v610_v16, %v4294_v61 }
  0xd2   : > { %v1634_v62 = vpop.f32.mrf.mxu0  ;;  %3508 = vmatmul.msk.f32.gmra.mxu1 %vm215_vm1, %v4429_v26 }
  0xd3   : > { %3541 = vmatmul.msk.f32.gmra.mxu2 %vm215_vm1, %v4466_v37 }
  0xd4   : > { %3606 = vmatmul.msk.f32.gmra.mxu3 %vm215_vm1, %v4067_v14 }
  0xd5   : > { %3671 = vmatmul.msk.f32.gmra.mxu0 %vm215_vm1, %v4469_v0 }
  0xd6   : > { %v951_v46 = vpop.f32.mrf.mxu2 }
  0xd7   : > { %v1079_v4 = vadd.f32 %v951_v46, %v738_v10  ;;  %v1293_v6 = vpop.f32.mrf.mxu3  ;;  %v613_v33 = vpop.f32.mrf.mxu1  ;;  %v4501_v10 = vld [vmem:[%s4027_s27 + $0xf1] sm:$0xff] }
  0xd8   : > { %v739_v14 = vadd.f32 %v613_v33, %v4316_v3 }
  0xd9   : > { %v1421_v58 = vadd.f32 %v1293_v6, %v1079_v4 }
  0xda   : > { %v1637_v26 = vpop.f32.mrf.mxu0  ;;  %3509 = vmatmul.msk.f32.gmra.mxu1 %vm215_vm1, %v4451_v12 }
  0xdb   : > { %v4486_v37 = vadd.f32 %v1634_v62, %v1421_v58  ;;  %3542 = vmatmul.msk.f32.gmra.mxu2 %vm215_vm1, %v4481_v2  ;;  %v4498_v62 = vld [vmem:[%s4027_s27 + $0xda] sm:$0xff] }
  0xdc   : > { %3607 = vmatmul.msk.f32.gmra.mxu3 %vm215_vm1, %v4084_v18 }
  0xdd   : > { %5168 = vst [vmem:[#allocation31_spill] sm:$0xff] %v4486_v37  ;;  %3672 = vmatmul.msk.f32.gmra.mxu0 %vm215_vm1, %v4484_v28 }
  0xde   : > { %v954_v61 = vpop.f32.mrf.mxu2 }
  0xdf   : > { %v1080_v4 = vadd.f32 %v954_v61, %v739_v14  ;;  %v1296_v16 = vpop.f32.mrf.mxu3  ;;  %v616_v58 = vpop.f32.mrf.mxu1  ;;  %v4515_v61 = vld [vmem:[%s4027_s27 + $0xe2] sm:$0xff] }
  0xe0   : > { %v740_v18 = vadd.f32 %v616_v58, %v4338_v13 }
  0xe1   : > { %v1422_v46 = vadd.f32 %v1296_v16, %v1080_v4 }
  0xe2   : > { %v1640_v6 = vpop.f32.mrf.mxu0  ;;  %3510 = vmatmul.msk.f32.gmra.mxu1 %vm215_vm1, %v4469_v0 }
  0xe3   : > { %v4503_v37 = vadd.f32 %v1637_v26, %v1422_v46  ;;  %3543 = vmatmul.msk.f32.gmra.mxu2 %vm215_vm1, %v4498_v62  ;;  %v4518_v46 = vld [vmem:[%s4027_s27 + $0xf9] sm:$0xff] }
  0xe4   : > { %3608 = vmatmul.msk.f32.gmra.mxu3 %vm215_vm1, %v4101_v22 }
  0xe5   : > { %5169 = vst [vmem:[#allocation32_spill] sm:$0xff] %v4503_v37  ;;  %3673 = vmatmul.msk.f32.gmra.mxu0 %vm215_vm1, %v4501_v10 }
  0xe6   : > { %v957_v3 = vpop.f32.mrf.mxu2 }
  0xe7   : > { %v1081_v33 = vadd.f32 %v957_v3, %v740_v18  ;;  %v1299_v14 = vpop.f32.mrf.mxu3  ;;  %v619_v26 = vpop.f32.mrf.mxu1  ;;  %v4532_v3 = vld [vmem:[%s4027_s27 + $0xf2] sm:$0xff] }
  0xe8   : > { %v741_v22 = vadd.f32 %v619_v26, %v4360_v27 }
  0xe9   : > { %v1423_v4 = vadd.f32 %v1299_v14, %v1081_v33 }
  0xea   : > { %v1643_v16 = vpop.f32.mrf.mxu0  ;;  %3511 = vmatmul.msk.f32.gmra.mxu1 %vm215_vm1, %v4484_v28 }
  0xeb   : > { %v4520_v37 = vadd.f32 %v1640_v6, %v1423_v4  ;;  %3544 = vmatmul.msk.f32.gmra.mxu2 %vm215_vm1, %v4515_v61  ;;  %v4535_v4 = vld [vmem:[%s4027_s27 + $0x109] sm:$0xff] }
  0xec   : > { %3609 = vmatmul.msk.f32.gmra.mxu3 %vm215_vm1, %v4133_v29 }
  0xed   : > { %5170 = vst [vmem:[#allocation33_spill] sm:$0xff] %v4520_v37  ;;  %3674 = vmatmul.msk.f32.gmra.mxu0 %vm215_vm1, %v4518_v46 }
  0xee   : > { %v960_v13 = vpop.f32.mrf.mxu2 }
  0xef   : > { %v1082_v58 = vadd.f32 %v960_v13, %v741_v22  ;;  %v1302_v18 = vpop.f32.mrf.mxu3  ;;  %v622_v6 = vpop.f32.mrf.mxu1  ;;  %v4549_v13 = vld [vmem:[%s4027_s27 + $0xfa] sm:$0xff] }
  0xf0   : > { %v742_v29 = vadd.f32 %v622_v6, %v4382_v44 }
  0xf1   : > { %v1424_v33 = vadd.f32 %v1302_v18, %v1082_v58 }
  0xf2   : > { %v1646_v14 = vpop.f32.mrf.mxu0  ;;  %3512 = vmatmul.msk.f32.gmra.mxu1 %vm215_vm1, %v4501_v10 }
  0xf3   : > { %v4537_v37 = vadd.f32 %v1643_v16, %v1424_v33  ;;  %3545 = vmatmul.msk.f32.gmra.mxu2 %vm215_vm1, %v4532_v3  ;;  %v4552_v33 = vld [vmem:[%s4027_s27 + $0x111] sm:$0xff] }
  0xf4   : > { %3610 = vmatmul.msk.f32.gmra.mxu3 %vm215_vm1, %v4157_v34 }
  0xf5   : > { %5171 = vst [vmem:[#allocation34_spill] sm:$0xff] %v4537_v37  ;;  %3675 = vmatmul.msk.f32.gmra.mxu0 %vm215_vm1, %v4535_v4 }
  0xf6   : > { %v963_v27 = vpop.f32.mrf.mxu2 }
  0xf7   : > { %v1083_v26 = vadd.f32 %v963_v27, %v742_v29  ;;  %v1305_v22 = vpop.f32.mrf.mxu3  ;;  %v625_v16 = vpop.f32.mrf.mxu1  ;;  %v4566_v27 = vld [vmem:[%s4027_s27 + $0x10a] sm:$0xff] }
  0xf8   : > { %v743_v34 = vadd.f32 %v625_v16, %v4404_v8 }
  0xf9   : > { %v1425_v58 = vadd.f32 %v1305_v22, %v1083_v26 }
  0xfa   : > { %v1649_v18 = vpop.f32.mrf.mxu0  ;;  %3513 = vmatmul.msk.f32.gmra.mxu1 %vm215_vm1, %v4518_v46 }
  0xfb   : > { %v4554_v37 = vadd.f32 %v1646_v14, %v1425_v58  ;;  %3546 = vmatmul.msk.f32.gmra.mxu2 %vm215_vm1, %v4549_v13  ;;  %v4569_v58 = vld [vmem:[%s4027_s27 + $0x121] sm:$0xff] }
  0xfc   : > { %3611 = vmatmul.msk.f32.gmra.mxu3 %vm215_vm1, %v4177_v38 }
  0xfd   : > { %5172 = vst [vmem:[#allocation35_spill] sm:$0xff] %v4554_v37  ;;  %3676 = vmatmul.msk.f32.gmra.mxu0 %vm215_vm1, %v4552_v33 }
  0xfe   : > { %v966_v44 = vpop.f32.mrf.mxu2 }
  0xff   : > { %v1084_v6 = vadd.f32 %v966_v44, %v743_v34  ;;  %v1308_v29 = vpop.f32.mrf.mxu3  ;;  %v628_v14 = vpop.f32.mrf.mxu1  ;;  %v4583_v44 = vld [vmem:[%s4027_s27 + $0x112] sm:$0xff] }
 0x100   : > { %v744_v38 = vadd.f32 %v628_v14, %v4426_v32 }
 0x101   : > { %v1426_v26 = vadd.f32 %v1308_v29, %v1084_v6 }
 0x102   : > { %v1652_v22 = vpop.f32.mrf.mxu0  ;;  %3514 = vmatmul.msk.f32.gmra.mxu1 %vm215_vm1, %v4535_v4 }
 0x103   : > { %v4571_v37 = vadd.f32 %v1649_v18, %v1426_v26  ;;  %3547 = vmatmul.msk.f32.gmra.mxu2 %vm215_vm1, %v4566_v27  ;;  %v4586_v26 = vld [vmem:[%s4027_s27 + $0x129] sm:$0xff] }
 0x104   : > { %3612 = vmatmul.msk.f32.gmra.mxu3 %vm215_vm1, %v4036_v7 }
 0x105   : > { %5173 = vst [vmem:[#allocation36_spill] sm:$0xff] %v4571_v37  ;;  %3677 = vmatmul.msk.f32.gmra.mxu0 %vm215_vm1, %v4569_v58 }
 0x106   : > { %v969_v8 = vpop.f32.mrf.mxu2 }
 0x107   : > { %v1085_v16 = vadd.f32 %v969_v8, %v744_v38  ;;  %v1311_v34 = vpop.f32.mrf.mxu3  ;;  %v631_v18 = vpop.f32.mrf.mxu1  ;;  %v4600_v8 = vld [vmem:[%s4027_s27 + $0x122] sm:$0xff] }
 0x108   : > { %v745_v7 = vadd.f32 %v631_v18, %v4448_v45 }
 0x109   : > { %v1427_v6 = vadd.f32 %v1311_v34, %v1085_v16 }
 0x10a   : > { %v1655_v29 = vpop.f32.mrf.mxu0  ;;  %3515 = vmatmul.msk.f32.gmra.mxu1 %vm215_vm1, %v4552_v33 }
 0x10b   : > { %v4588_v37 = vadd.f32 %v1652_v22, %v1427_v6  ;;  %3548 = vmatmul.msk.f32.gmra.mxu2 %vm215_vm1, %v4583_v44  ;;  %v4603_v6 = vld [vmem:[%s4027_s27 + $0x139] sm:$0xff] }
 0x10c   : > { %3613 = vmatmul.msk.f32.gmra.mxu3 %vm215_vm1, %v4053_v11 }
 0x10d   : > { %5174 = vst [vmem:[#allocation37_spill] sm:$0xff] %v4588_v37  ;;  %3678 = vmatmul.msk.f32.gmra.mxu0 %vm215_vm1, %v4586_v26 }
 0x10e   : > { %v972_v32 = vpop.f32.mrf.mxu2 }
 0x10f   : > { %v1086_v14 = vadd.f32 %v972_v32, %v745_v7  ;;  %v1314_v38 = vpop.f32.mrf.mxu3  ;;  %v634_v22 = vpop.f32.mrf.mxu1  ;;  %v4617_v32 = vld [vmem:[%s4027_s27 + $0x12a] sm:$0xff] }
 0x110   : > { %v746_v11 = vadd.f32 %v634_v22, %v4289_v59 }
 0x111   : > { %v1428_v16 = vadd.f32 %v1314_v38, %v1086_v14 }
 0x112   : > { %v1658_v34 = vpop.f32.mrf.mxu0  ;;  %3516 = vmatmul.msk.f32.gmra.mxu1 %vm215_vm1, %v4569_v58 }
 0x113   : > { %v4605_v37 = vadd.f32 %v1655_v29, %v1428_v16  ;;  %3549 = vmatmul.msk.f32.gmra.mxu2 %vm215_vm1, %v4600_v8  ;;  %v4620_v16 = vld [vmem:[%s4027_s27 + $0x141] sm:$0xff] }
 0x114   : > { %3614 = vmatmul.msk.f32.gmra.mxu3 %vm215_vm1, %v4070_v15 }
 0x115   : > { %5175 = vst [vmem:[#allocation38_spill] sm:$0xff] %v4605_v37  ;;  %3679 = vmatmul.msk.f32.gmra.mxu0 %vm215_vm1, %v4603_v6 }
 0x116   : > { %v975_v45 = vpop.f32.mrf.mxu2 }
 0x117   : > { %v1087_v18 = vadd.f32 %v975_v45, %v746_v11  ;;  %v1317_v7 = vpop.f32.mrf.mxu3  ;;  %v637_v29 = vpop.f32.mrf.mxu1  ;;  %v4634_v45 = vld [vmem:[%s4027_s27 + $0x13a] sm:$0xff] }
 0x118   : > { %v747_v15 = vadd.f32 %v637_v29, %v4311_v1 }
 0x119   : > { %v1429_v14 = vadd.f32 %v1317_v7, %v1087_v18 }
 0x11a   : > { %v1661_v38 = vpop.f32.mrf.mxu0  ;;  %3517 = vmatmul.msk.f32.gmra.mxu1 %vm215_vm1, %v4586_v26 }
 0x11b   : > { %v4622_v37 = vadd.f32 %v1658_v34, %v1429_v14  ;;  %3550 = vmatmul.msk.f32.gmra.mxu2 %vm215_vm1, %v4617_v32  ;;  %v4637_v14 = vld [vmem:[%s4027_s27 + $0x151] sm:$0xff] }
 0x11c   : > { %3615 = vmatmul.msk.f32.gmra.mxu3 %vm215_vm1, %v4087_v19 }
 0x11d   : > { %5176 = vst [vmem:[#allocation39_spill] sm:$0xff] %v4622_v37  ;;  %3680 = vmatmul.msk.f32.gmra.mxu0 %vm215_vm1, %v4620_v16 }
 0x11e   : > { %v978_v59 = vpop.f32.mrf.mxu2 }
 0x11f   : > { %v1088_v22 = vadd.f32 %v978_v59, %v747_v15  ;;  %v1320_v11 = vpop.f32.mrf.mxu3  ;;  %v640_v34 = vpop.f32.mrf.mxu1  ;;  %v4651_v59 = vld [vmem:[%s4027_s27 + $0x142] sm:$0xff] }
 0x120   : > { %v748_v19 = vadd.f32 %v640_v34, %v4333_v9 }
 0x121   : > { %v1430_v18 = vadd.f32 %v1320_v11, %v1088_v22 }
 0x122   : > { %v1664_v7 = vpop.f32.mrf.mxu0  ;;  %3518 = vmatmul.msk.f32.gmra.mxu1 %vm215_vm1, %v4603_v6 }
 0x123   : > { %v4639_v37 = vadd.f32 %v1661_v38, %v1430_v18  ;;  %3551 = vmatmul.msk.f32.gmra.mxu2 %vm215_vm1, %v4634_v45  ;;  %v4654_v18 = vld [vmem:[%s4027_s27 + $0x159] sm:$0xff] }
 0x124   : > { %3616 = vmatmul.msk.f32.gmra.mxu3 %vm215_vm1, %v4104_v23 }
 0x125   : > { %5177 = vst [vmem:[#allocation40_spill] sm:$0xff] %v4639_v37  ;;  %3681 = vmatmul.msk.f32.gmra.mxu0 %vm215_vm1, %v4637_v14 }
 0x126   : > { %v981_v1 = vpop.f32.mrf.mxu2 }
 0x127   : > { %v1089_v29 = vadd.f32 %v981_v1, %v748_v19  ;;  %v1323_v15 = vpop.f32.mrf.mxu3  ;;  %v643_v38 = vpop.f32.mrf.mxu1  ;;  %v4668_v1 = vld [vmem:[%s4027_s27 + $0x152] sm:$0xff] }
 0x128   : > { %v749_v23 = vadd.f32 %v643_v38, %v4355_v25 }
 0x129   : > { %v1431_v22 = vadd.f32 %v1323_v15, %v1089_v29 }
 0x12a   : > { %v1667_v11 = vpop.f32.mrf.mxu0  ;;  %3519 = vmatmul.msk.f32.gmra.mxu1 %vm215_vm1, %v4620_v16 }
 0x12b   : > { %v4656_v37 = vadd.f32 %v1664_v7, %v1431_v22  ;;  %3552 = vmatmul.msk.f32.gmra.mxu2 %vm215_vm1, %v4651_v59  ;;  %v4671_v22 = vld [vmem:[%s4027_s27 + $0x169] sm:$0xff] }
 0x12c   : > { %3617 = vmatmul.msk.f32.gmra.mxu3 %vm215_vm1, %v4136_v30  ;;  %5179 = vst [vmem:[#allocation42_spill] sm:$0xff] %v4671_v22 }
 0x12d   : > { %5178 = vst [vmem:[#allocation41_spill] sm:$0xff] %v4656_v37  ;;  %3682 = vmatmul.msk.f32.gmra.mxu0 %vm215_vm1, %v4654_v18 }
 0x12e   : > { %v984_v9 = vpop.f32.mrf.mxu2 }
 0x12f   : > { %v1090_v34 = vadd.f32 %v984_v9, %v749_v23  ;;  %v1326_v19 = vpop.f32.mrf.mxu3  ;;  %v646_v7 = vpop.f32.mrf.mxu1  ;;  %v4685_v9 = vld [vmem:[%s4027_s27 + $0x15a] sm:$0xff] }
 0x130   : > { %v750_v30 = vadd.f32 %v646_v7, %v4377_v42  ;;  %5181 = vst [vmem:[#allocation44_spill] sm:$0xff] %v4685_v9 }
 0x131   : > { %v1432_v29 = vadd.f32 %v1326_v19, %v1090_v34 }
 0x132   : > { %v1670_v15 = vpop.f32.mrf.mxu0  ;;  %3520 = vmatmul.msk.f32.gmra.mxu1 %vm215_vm1, %v4637_v14 }
 0x133   : > { %v4673_v37 = vadd.f32 %v1667_v11, %v1432_v29  ;;  %3553 = vmatmul.msk.f32.gmra.mxu2 %vm215_vm1, %v4668_v1  ;;  %v4688_v29 = vld [vmem:[%s4027_s27 + $0x171] sm:$0xff] }
 0x134   : > { %3618 = vmatmul.msk.f32.gmra.mxu3 %vm215_vm1, %v4160_v35 }
 0x135   : > { %5180 = vst [vmem:[#allocation43_spill] sm:$0xff] %v4673_v37  ;;  %3683 = vmatmul.msk.f32.gmra.mxu0 %vm215_vm1, %v4671_v22 }
 0x136   : > { %v987_v25 = vpop.f32.mrf.mxu2 }
 0x137   : > { %v1091_v38 = vadd.f32 %v987_v25, %v750_v30  ;;  %v1329_v23 = vpop.f32.mrf.mxu3  ;;  %v649_v11 = vpop.f32.mrf.mxu1 }
 0x138   : > { %v751_v35 = vadd.f32 %v649_v11, %v4399_v41 }
 0x139   : > { %v1433_v34 = vadd.f32 %v1329_v23, %v1091_v38  ;;  %v3587_v23 = vld [vmem:[%s4027_s27 + $0x180] sm:$0xff] }
 0x13a   : > { %v1673_v19 = vpop.f32.mrf.mxu0  ;;  %3521 = vmatmul.msk.f32.gmra.mxu1 %vm215_vm1, %v4654_v18 }
 0x13b   : > { %v4690_v37 = vadd.f32 %v1670_v15, %v1433_v34  ;;  %3554 = vmatmul.msk.f32.gmra.mxu2 %vm215_vm1, %v4685_v9  ;;  %v4702_v15 = vld [vmem:[%s4027_s27 + $0x16a] sm:$0xff] }
 0x13c   : > { %3619 = vmatmul.msk.f32.gmra.mxu3 %vm215_vm1, %v4180_v39  ;;  %v3653_v9 = vld [vmem:[%s4027_s27 + $0x189] sm:$0xff] }
 0x13d   : > { %5182 = vst [vmem:[#allocation45_spill] sm:$0xff] %v4690_v37  ;;  %3684 = vmatmul.msk.f32.gmra.mxu0 %vm215_vm1, %v4688_v29  ;;  %v4706_v37 = vld [vmem:[%s4027_s27 + $0x181] sm:$0xff] }
 0x13e   : > { %v990_v42 = vpop.f32.mrf.mxu2  ;;  %5183 = vst [vmem:[#allocation46_spill] sm:$0xff] %v4706_v37 }
 0x13f   : > { %v1092_v7 = vadd.f32 %v990_v42, %v751_v35  ;;  %v1332_v30 = vpop.f32.mrf.mxu3  ;;  %v652_v25 = vpop.f32.mrf.mxu1 }
 0x140   : > { %v752_v41 = vadd.f32 %v652_v25, %v4421_v43 }
 0x141   : > { %v1434_v38 = vadd.f32 %v1332_v30, %v1092_v7  ;;  %v833_v30 = vld [vmem:[%s4027_s27 + $0x172] sm:$0xff] }
 0x142   : > { %v1676_v34 = vpop.f32.mrf.mxu0  ;;  %3522 = vmatmul.msk.f32.gmra.mxu1 %vm215_vm1, %v4671_v22 }
 0x143   : > { %v4708_v39 = vadd.f32 %v1673_v19, %v1434_v38  ;;  %3555 = vmatmul.msk.f32.gmra.mxu2 %vm215_vm1, %v4702_v15  ;;  %v3588_v38 = vld [vmem:[%s4027_s27 + $0x188] sm:$0xff] }
 0x144   : > { %3620 = vmatmul.msk.f32.gmra.mxu3 %vm215_vm1, %v3587_v23 }
 0x145   : > { %5184 = vst [vmem:[#allocation47_spill] sm:$0xff] %v4708_v39  ;;  %3685 = vmatmul.msk.f32.gmra.mxu0 %vm215_vm1, %v4706_v37 }
 0x146   : > { %v993_v11 = vpop.f32.mrf.mxu2 }
 0x147   : > { %v1093_v35 = vadd.f32 %v993_v11, %v752_v41  ;;  %v1335_v42 = vpop.f32.mrf.mxu3  ;;  %v655_v7 = vpop.f32.mrf.mxu1 }
 0x148   : > { %v753_v43 = vadd.f32 %v655_v7, %v4443_v20 }
 0x149   : > { %v1435_v19 = vadd.f32 %v1335_v42, %v1093_v35 }
 0x14a   : > { %v1679_v39 = vpop.f32.mrf.mxu0  ;;  %3523 = vmatmul.msk.f32.gmra.mxu1 %vm215_vm1, %v4688_v29 }
 0x14b   : > { %v4721_v22 = vadd.f32 %v1676_v34, %v1435_v19  ;;  %3556 = vmatmul.msk.f32.gmra.mxu2 %vm215_vm1, %v833_v30 }
 0x14c   : > { %3621 = vmatmul.msk.f32.gmra.mxu3 %vm215_vm1, %v3588_v38 }
 0x14d   : > { %3686 = vmatmul.msk.f32.gmra.mxu0 %vm215_vm1, %v3653_v9 }
 0x14e   : > { %v996_v25 = vpop.f32.mrf.mxu2 }
 0x14f   : > { %v1094_v23 = vadd.f32 %v996_v25, %v753_v43  ;;  %v1338_v41 = vpop.f32.mrf.mxu3  ;;  %v658_v11 = vpop.f32.mrf.mxu1 }
 0x150   : > { %v754_v20 = vadd.f32 %v658_v11, %v4307_v63 }
 0x151   : > { %v1436_v35 = vadd.f32 %v1338_v41, %v1094_v23 }
 0x152   : > { %v1682_v42 = vpop.f32.mrf.mxu0  ;;  %3720 = vmatmul.msk.f32.vlgmr.msra.gmra.mxu1 %vm215_vm1, %v4208_v47 }
 0x153   : > { %v4729_v37 = vadd.f32 %v1679_v39, %v1436_v35  ;;  %3785 = vmatmul.msk.f32.vlgmr.msra.gmra.mxu2 %vm215_vm1, %v4107_v24 }
 0x154   : > { %3850 = vmatmul.msk.f32.vlgmr.msra.gmra.mxu3 %vm215_vm1, %v4211_v48 }
 0x155   : > { %3915 = vmatmul.msk.f32.vlgmr.msra.gmra.mxu0 %vm215_vm1, %v4234_v51 }
 0x156   : > { %v999_v9 = vpop.f32.mrf.mxu2 }
 0x157   : > { %v1095_v34 = vadd.f32 %v999_v9, %v754_v20  ;;  %v1341_v7 = vpop.f32.mrf.mxu3  ;;  %v661_v30 = vpop.f32.mrf.mxu1 }
 0x158   : > { %v755_v24 = vadd.f32 %v661_v30, %v4329_v5 }
 0x159   : > { %v1437_v39 = vadd.f32 %v1341_v7, %v1095_v34  ;;  %v3756_v34 = vld [vmem:[%s4027_s27 + $0x60] sm:$0xff] }
 0x15a   : > { %v1685_v19 = vpop.f32.mrf.mxu0  ;;  %3721 = vmatmul.msk.f32.gmra.mxu1 %vm215_vm1, %v4221_v49 }
 0x15b   : > { %v4740_v38 = vadd.f32 %v1682_v42, %v1437_v39  ;;  %3786 = vmatmul.msk.f32.gmra.mxu2 %vm215_vm1, %v4139_v31 }
 0x15c   : > { %3851 = vmatmul.msk.f32.gmra.mxu3 %vm215_vm1, %v4224_v50 }
 0x15d   : > { %3916 = vmatmul.msk.f32.gmra.mxu0 %vm215_vm1, %v4248_v53 }
 0x15e   : > { %v1002_v47 = vpop.f32.mrf.mxu2 }
 0x15f   : > { %v1096_v48 = vadd.f32 %v1002_v47, %v755_v24  ;;  %v1344_v63 = vpop.f32.mrf.mxu3  ;;  %v664_v43 = vpop.f32.mrf.mxu1  ;;  %v3757_v47 = vld [vmem:[%s4027_s27 + $0x68] sm:$0xff] }
 0x160   : > { %v756_v31 = vadd.f32 %v664_v43, %v4351_v17 }
 0x161   : > { %v1438_v25 = vadd.f32 %v1344_v63, %v1096_v48 }
 0x162   : > { %v1688_v23 = vpop.f32.mrf.mxu0  ;;  %3722 = vmatmul.msk.f32.gmra.mxu1 %vm215_vm1, %v4234_v51 }
 0x163   : > { %v4751_v41 = vadd.f32 %v1685_v19, %v1438_v25  ;;  %3787 = vmatmul.msk.f32.gmra.mxu2 %vm215_vm1, %v4163_v36  ;;  %v5188_v25 = vld [vmem:[#allocation21_spill] sm:$0xff] }
 0x164   : > { %3852 = vmatmul.msk.f32.gmra.mxu3 %vm215_vm1, %v4237_v52 }
 0x165   : > { %3917 = vmatmul.msk.f32.gmra.mxu0 %vm215_vm1, %v4262_v55 }
 0x166   : > { %v1005_v49 = vpop.f32.mrf.mxu2 }
 0x167   : > { %v1097_v50 = vadd.f32 %v1005_v49, %v756_v31  ;;  %v1347_v5 = vpop.f32.mrf.mxu3  ;;  %v667_v11 = vpop.f32.mrf.mxu1 }
 0x168   : > { %v757_v36 = vadd.f32 %v667_v11, %v4373_v21  ;;  %v3758_v11 = vld [vmem:[%s4027_s27 + $0x78] sm:$0xff] }
 0x169   : > { %v1439_v35 = vadd.f32 %v1347_v5, %v1097_v50 }
 0x16a   : > { %v1691_v42 = vpop.f32.mrf.mxu0  ;;  %3723 = vmatmul.msk.f32.gmra.mxu1 %vm215_vm1, %v4248_v53 }
 0x16b   : > { %v4762_v20 = vadd.f32 %v1688_v23, %v1439_v35  ;;  %3788 = vmatmul.msk.f32.gmra.mxu2 %vm215_vm1, %v4183_v40  ;;  %v5185_v40 = vld [vmem:[#allocation17_spill] sm:$0xff] }
 0x16c   : > { %3853 = vmatmul.msk.f32.gmra.mxu3 %vm215_vm1, %v4251_v54 }
 0x16d   : > { %3918 = vmatmul.msk.f32.gmra.mxu0 %vm215_vm1, %v4276_v57 }
 0x16e   : > { %v1008_v51 = vpop.f32.mrf.mxu2 }
 0x16f   : > { %v1098_v52 = vadd.f32 %v1008_v51, %v757_v36  ;;  %v1350_v17 = vpop.f32.mrf.mxu3  ;;  %v670_v9 = vpop.f32.mrf.mxu1  ;;  %v5190_v51 = vld [vmem:[#allocation9_spill] sm:$0xff] }
 0x170   : > { %v758_v54 = vadd.f32 %v670_v9, %v5185_v40  ;;  %v3759_v40 = vld [vmem:[%s4027_s27 + $0x80] sm:$0xff] }
 0x171   : > { %v1440_v7 = vadd.f32 %v1350_v17, %v1098_v52  ;;  %v5191_v52 = vld [vmem:[#allocation25_spill] sm:$0xff] }
 0x172   : > { %v1694_v30 = vpop.f32.mrf.mxu0  ;;  %3724 = vmatmul.msk.f32.gmra.mxu1 %vm215_vm1, %v4262_v55  ;;  %v5186_v55 = vld [vmem:[#allocation3_spill] sm:$0xff] }
 0x173   : > { %v4774_v53 = vadd.f32 %v1691_v42, %v1440_v7  ;;  %3789 = vmatmul.msk.f32.gmra.mxu2 %vm215_vm1, %v3756_v34 }
 0x174   : > { %3854 = vmatmul.msk.f32.gmra.mxu3 %vm215_vm1, %v4265_v56  ;;  %v5187_v56 = vld [vmem:[#allocation6_spill] sm:$0xff] }
 0x175   : > { %3919 = vmatmul.msk.f32.gmra.mxu0 %vm215_vm1, %v4292_v60 }
 0x176   : > { %v1011_v21 = vpop.f32.mrf.mxu2 }
 0x177   : > { %v1099_v39 = vadd.f32 %v1011_v21, %v758_v54  ;;  %v1353_v19 = vpop.f32.mrf.mxu3  ;;  %v673_v24 = vpop.f32.mrf.mxu1 }
 0x178   : > { %v759_v23 = vadd.f32 %v673_v24, %v5188_v25  ;;  %v5194_v24 = vld [vmem:[#allocation28_spill] sm:$0xff] }
 0x179   : > { %v1441_v48 = vadd.f32 %v1353_v19, %v1099_v39  ;;  %v5193_v19 = vld [vmem:[#allocation12_spill] sm:$0xff] }
 0x17a   : > { %v1697_v63 = vpop.f32.mrf.mxu0  ;;  %3725 = vmatmul.msk.f32.gmra.mxu1 %vm215_vm1, %v4276_v57  ;;  %v5189_v57 = vld [vmem:[#allocation4_spill] sm:$0xff] }
 0x17b   : > { %v4785_v43 = vadd.f32 %v1694_v30, %v1441_v48  ;;  %3790 = vmatmul.msk.f32.gmra.mxu2 %vm215_vm1, %v3757_v47 }
 0x17c   : > { %3855 = vmatmul.msk.f32.gmra.mxu3 %vm215_vm1, %v5186_v55 }
 0x17d   : > { %3920 = vmatmul.msk.f32.gmra.mxu0 %vm215_vm1, %v5187_v56 }
 0x17e   : > { %v1014_v31 = vpop.f32.mrf.mxu2 }
 0x17f   : > { %v1100_v49 = vadd.f32 %v1014_v31, %v759_v23  ;;  %v1356_v50 = vpop.f32.mrf.mxu3  ;;  %v676_v5 = vpop.f32.mrf.mxu1  ;;  %v3760_v23 = vld [vmem:[%s4027_s27 + $0x90] sm:$0xff] }
 0x180   : > { %v760_v17 = vadd.f32 %v676_v5, %v5191_v52  ;;  %v5196_v5 = vld [vmem:[#allocation15_spill] sm:$0xff] }
 0x181   : > { %v1442_v35 = vadd.f32 %v1356_v50, %v1100_v49 }
 0x182   : > { %v1700_v42 = vpop.f32.mrf.mxu0  ;;  %3726 = vmatmul.msk.f32.gmra.mxu1 %vm215_vm1, %v4292_v60  ;;  %v5192_v60 = vld [vmem:[#allocation7_spill] sm:$0xff] }
 0x183   : > { %v4796_v36 = vadd.f32 %v1697_v63, %v1442_v35  ;;  %3791 = vmatmul.msk.f32.gmra.mxu2 %vm215_vm1, %v3758_v11  ;;  %v5197_v11 = vld [vmem:[#allocation5_spill] sm:$0xff] }
 0x184   : > { %3856 = vmatmul.msk.f32.gmra.mxu3 %vm215_vm1, %v5189_v57 }
 0x185   : > { %3921 = vmatmul.msk.f32.gmra.mxu0 %vm215_vm1, %v5190_v51 }
 0x186   : > { %v1017_v9 = vpop.f32.mrf.mxu2 }
 0x187   : > { %v1101_v34 = vadd.f32 %v1017_v9, %v760_v17  ;;  %v1359_v7 = vpop.f32.mrf.mxu3  ;;  %v679_v30 = vpop.f32.mrf.mxu1  ;;  %v3761_v9 = vld [vmem:[%s4027_s27 + $0x98] sm:$0xff] }
 0x188   : > { %v761_v47 = vadd.f32 %v679_v30, %v5194_v24 }
 0x189   : > { %v1443_v54 = vadd.f32 %v1359_v7, %v1101_v34 }
 0x18a   : > { %v1703_v21 = vpop.f32.mrf.mxu0  ;;  %3727 = vmatmul.msk.f32.gmra.mxu1 %vm215_vm1, %v5187_v56  ;;  %v5195_v56 = vld [vmem:[#allocation10_spill] sm:$0xff] }
 0x18b   : > { %v4807_v39 = vadd.f32 %v1700_v42, %v1443_v54  ;;  %3792 = vmatmul.msk.f32.gmra.mxu2 %vm215_vm1, %v3759_v40  ;;  %v5199_v40 = vld [vmem:[#allocation19_spill] sm:$0xff]  ;;  %v5200_v54 = vld [vmem:[#allocation8_spill] sm:$0xff] }
 0x18c   : > { %3857 = vmatmul.msk.f32.gmra.mxu3 %vm215_vm1, %v5192_v60 }
 0x18d   : > { %3922 = vmatmul.msk.f32.gmra.mxu0 %vm215_vm1, %v5193_v19 }
 0x18e   : > { %v1020_v48 = vpop.f32.mrf.mxu2 }
 0x18f   : > { %v1102_v63 = vadd.f32 %v1020_v48, %v761_v47  ;;  %v1362_v55 = vpop.f32.mrf.mxu3  ;;  %v682_v25 = vpop.f32.mrf.mxu1 }
 0x190   : > { %v762_v35 = vadd.f32 %v682_v25, %v5197_v11 }
 0x191   : > { %v1444_v31 = vadd.f32 %v1362_v55, %v1102_v63  ;;  %v3762_v63 = vld [vmem:[%s4027_s27 + $0xa8] sm:$0xff] }
 0x192   : > { %v1706_v49 = vpop.f32.mrf.mxu0  ;;  %3728 = vmatmul.msk.f32.gmra.mxu1 %vm215_vm1, %v5190_v51  ;;  %v5198_v51 = vld [vmem:[#allocation13_spill] sm:$0xff] }
 0x193   : > { %v4818_v50 = vadd.f32 %v1703_v21, %v1444_v31  ;;  %3793 = vmatmul.msk.f32.gmra.mxu2 %vm215_vm1, %v3760_v23  ;;  %v5202_v31 = vld [vmem:[#allocation23_spill] sm:$0xff] }
 0x194   : > { %3858 = vmatmul.msk.f32.gmra.mxu3 %vm215_vm1, %v5195_v56 }
 0x195   : > { %3923 = vmatmul.msk.f32.gmra.mxu0 %vm215_vm1, %v5196_v5 }
 0x196   : > { %v1023_v42 = vpop.f32.mrf.mxu2 }
 0x197   : > { %v1103_v57 = vadd.f32 %v1023_v42, %v762_v35  ;;  %v1365_v52 = vpop.f32.mrf.mxu3  ;;  %v685_v17 = vpop.f32.mrf.mxu1 }
 0x198   : > { %v763_v21 = vadd.f32 %v685_v17, %v5200_v54 }
 0x199   : > { %v1445_v34 = vadd.f32 %v1365_v52, %v1103_v57  ;;  %v3763_v52 = vld [vmem:[%s4027_s27 + $0xb0] sm:$0xff] }
 0x19a   : > { %v1709_v7 = vpop.f32.mrf.mxu0  ;;  %3729 = vmatmul.msk.f32.gmra.mxu1 %vm215_vm1, %v5193_v19  ;;  %v5201_v19 = vld [vmem:[#allocation16_spill] sm:$0xff] }
 0x19b   : > { %v4829_v30 = vadd.f32 %v1706_v49, %v1445_v34  ;;  %3794 = vmatmul.msk.f32.gmra.mxu2 %vm215_vm1, %v3761_v9  ;;  %v5203_v49 = vld [vmem:[#allocation11_spill] sm:$0xff] }
 0x19c   : > { %3859 = vmatmul.msk.f32.gmra.mxu3 %vm215_vm1, %v5198_v51  ;;  %v5206_v51 = vld [vmem:[#allocation14_spill] sm:$0xff] }
 0x19d   : > { %3924 = vmatmul.msk.f32.gmra.mxu0 %vm215_vm1, %v5199_v40 }
 0x19e   : > { %v1026_v60 = vpop.f32.mrf.mxu2 }
 0x19f   : > { %v1104_v24 = vadd.f32 %v1026_v60, %v763_v21  ;;  %v1368_v47 = vpop.f32.mrf.mxu3  ;;  %v688_v48 = vpop.f32.mrf.mxu1 }
 0x1a0   : > { %v764_v56 = vadd.f32 %v688_v48, %v5203_v49  ;;  %v3764_v48 = vld [vmem:[%s4027_s27 + $0xc0] sm:$0xff]  ;;  %v5209_v49 = vld [vmem:[#allocation18_spill] sm:$0xff] }
 0x1a1   : > { %v1446_v55 = vadd.f32 %v1368_v47, %v1104_v24 }
 0x1a2   : > { %v1712_v25 = vpop.f32.mrf.mxu0  ;;  %3730 = vmatmul.msk.f32.gmra.mxu1 %vm215_vm1, %v5196_v5  ;;  %v5204_v5 = vld [vmem:[#allocation20_spill] sm:$0xff] }
 0x1a3   : > { %v4840_v23 = vadd.f32 %v1709_v7, %v1446_v55  ;;  %3795 = vmatmul.msk.f32.gmra.mxu2 %vm215_vm1, %v3762_v63  ;;  %v5205_v7 = vld [vmem:[#allocation27_spill] sm:$0xff] }
 0x1a4   : > { %3860 = vmatmul.msk.f32.gmra.mxu3 %vm215_vm1, %v5201_v19  ;;  %v5208_v19 = vld [vmem:[#allocation30_spill] sm:$0xff] }
 0x1a5   : > { %3925 = vmatmul.msk.f32.gmra.mxu0 %vm215_vm1, %v5202_v31 }
 0x1a6   : > { %v1029_v11 = vpop.f32.mrf.mxu2 }
 0x1a7   : > { %v1105_v35 = vadd.f32 %v1029_v11, %v764_v56  ;;  %v1371_v42 = vpop.f32.mrf.mxu3  ;;  %v691_v57 = vpop.f32.mrf.mxu1 }
 0x1a8   : > { %v765_v54 = vadd.f32 %v691_v57, %v5206_v51 }
 0x1a9   : > { %v1447_v17 = vadd.f32 %v1371_v42, %v1105_v35 }
 0x1aa   : > { %v1715_v9 = vpop.f32.mrf.mxu0  ;;  %3731 = vmatmul.msk.f32.gmra.mxu1 %vm215_vm1, %v5199_v40  ;;  %v5207_v40 = vld [vmem:[#allocation24_spill] sm:$0xff] }
 0x1ab   : > { %v4851_v34 = vadd.f32 %v1712_v25, %v1447_v17  ;;  %3796 = vmatmul.msk.f32.gmra.mxu2 %vm215_vm1, %v3763_v52  ;;  %v3765_v52 = vld [vmem:[%s4027_s27 + $0xc8] sm:$0xff] }
 0x1ac   : > { %3861 = vmatmul.msk.f32.gmra.mxu3 %vm215_vm1, %v5204_v5 }
 0x1ad   : > { %3926 = vmatmul.msk.f32.gmra.mxu0 %vm215_vm1, %v5205_v7 }
 0x1ae   : > { %v1032_v21 = vpop.f32.mrf.mxu2 }
 0x1af   : > { %v1106_v60 = vadd.f32 %v1032_v21, %v765_v54  ;;  %v1374_v24 = vpop.f32.mrf.mxu3  ;;  %v694_v47 = vpop.f32.mrf.mxu1 }
 0x1b0   : > { %v766_v56 = vadd.f32 %v694_v47, %v5209_v49  ;;  %v3766_v47 = vld [vmem:[%s4027_s27 + $0xd8] sm:$0xff] }
 0x1b1   : > { %v1448_v63 = vadd.f32 %v1374_v24, %v1106_v60 }
 0x1b2   : > { %v1718_v55 = vpop.f32.mrf.mxu0  ;;  %3732 = vmatmul.msk.f32.gmra.mxu1 %vm215_vm1, %v5202_v31  ;;  %v5210_v31 = vld [vmem:[#allocation22_spill] sm:$0xff] }
 0x1b3   : > { %v4862_v25 = vadd.f32 %v1715_v9, %v1448_v63  ;;  %3797 = vmatmul.msk.f32.gmra.mxu2 %vm215_vm1, %v3764_v48 }
 0x1b4   : > { %3862 = vmatmul.msk.f32.gmra.mxu3 %vm215_vm1, %v5207_v40 }
 0x1b5   : > { %3927 = vmatmul.msk.f32.gmra.mxu0 %vm215_vm1, %v5208_v19 }
 0x1b6   : > { %v1035_v11 = vpop.f32.mrf.mxu2 }
 0x1b7   : > { %v1107_v35 = vadd.f32 %v1035_v11, %v766_v56  ;;  %v1377_v42 = vpop.f32.mrf.mxu3  ;;  %v697_v57 = vpop.f32.mrf.mxu1 }
 0x1b8   : > { %v767_v51 = vadd.f32 %v697_v57, %v5210_v31 }
 0x1b9   : > { %v1449_v17 = vadd.f32 %v1377_v42, %v1107_v35  ;;  %v3767_v35 = vld [vmem:[%s4027_s27 + $0xe0] sm:$0xff] }
 0x1ba   : > { %v1721_v9 = vpop.f32.mrf.mxu0  ;;  %3733 = vmatmul.msk.f32.gmra.mxu1 %vm215_vm1, %v5205_v7 }
 0x1bb   : > { %v4873_v5 = vadd.f32 %v1718_v55, %v1449_v17  ;;  %3798 = vmatmul.msk.f32.gmra.mxu2 %vm215_vm1, %v3765_v52 }
 0x1bc   : > { %3863 = vmatmul.msk.f32.gmra.mxu3 %vm215_vm1, %v4451_v12  ;;  %v5211_v12 = vld [vmem:[#allocation26_spill] sm:$0xff] }
 0x1bd   : > { %3928 = vmatmul.msk.f32.gmra.mxu0 %vm215_vm1, %v4481_v2 }
 0x1be   : > { %v1038_v54 = vpop.f32.mrf.mxu2 }
 0x1bf   : > { %v1108_v21 = vadd.f32 %v1038_v54, %v767_v51  ;;  %v1380_v60 = vpop.f32.mrf.mxu3  ;;  %v700_v24 = vpop.f32.mrf.mxu1  ;;  %v3768_v54 = vld [vmem:[%s4027_s27 + $0xf0] sm:$0xff] }
 0x1c0   : > { %v768_v7 = vadd.f32 %v700_v24, %v5211_v12 }
 0x1c1   : > { %v1450_v48 = vadd.f32 %v1380_v60, %v1108_v21 }
 0x1c2   : > { %v1724_v63 = vpop.f32.mrf.mxu0  ;;  %3734 = vmatmul.msk.f32.gmra.mxu1 %vm215_vm1, %v5208_v19 }
 0x1c3   : > { %v4884_v55 = vadd.f32 %v1721_v9, %v1450_v48  ;;  %3799 = vmatmul.msk.f32.gmra.mxu2 %vm215_vm1, %v3766_v47 }
 0x1c4   : > { %3864 = vmatmul.msk.f32.gmra.mxu3 %vm215_vm1, %v4469_v0  ;;  %v5212_v0 = vld [vmem:[#allocation29_spill] sm:$0xff] }
 0x1c5   : > { %3929 = vmatmul.msk.f32.gmra.mxu0 %vm215_vm1, %v4498_v62 }
 0x1c6   : > { %v1041_v40 = vpop.f32.mrf.mxu2 }
 0x1c7   : > { %v1109_v49 = vadd.f32 %v1041_v40, %v768_v7  ;;  %v1383_v56 = vpop.f32.mrf.mxu3  ;;  %v703_v11 = vpop.f32.mrf.mxu1  ;;  %v3769_v7 = vld [vmem:[%s4027_s27 + $0xf8] sm:$0xff] }
 0x1c8   : > { %v769_v19 = vadd.f32 %v703_v11, %v5212_v0  ;;  %v3770_v0 = vld [vmem:[%s4027_s27 + $0x108] sm:$0xff] }
 0x1c9   : > { %v1451_v42 = vadd.f32 %v1383_v56, %v1109_v49 }
 0x1ca   : > { %v1727_v57 = vpop.f32.mrf.mxu0  ;;  %3735 = vmatmul.msk.f32.gmra.mxu1 %vm215_vm1, %v4481_v2 }
 0x1cb   : > { %v4895_v52 = vadd.f32 %v1724_v63, %v1451_v42  ;;  %3800 = vmatmul.msk.f32.gmra.mxu2 %vm215_vm1, %v3767_v35 }
 0x1cc   : > { %3865 = vmatmul.msk.f32.gmra.mxu3 %vm215_vm1, %v4484_v28  ;;  %v5213_v28 = vld [vmem:[#allocation31_spill] sm:$0xff] }
 0x1cd   : > { %3930 = vmatmul.msk.f32.gmra.mxu0 %vm215_vm1, %v4515_v61 }
 0x1ce   : > { %v1044_v17 = vpop.f32.mrf.mxu2 }
 0x1cf   : > { %v1110_v9 = vadd.f32 %v1044_v17, %v769_v19  ;;  %v1386_v31 = vpop.f32.mrf.mxu3  ;;  %v1975_v51 = vpop.f32.mrf.mxu1 }
 0x1d0   : > { %v2103_v24 = vadd.f32 %v1975_v51, %v5213_v28 }
 0x1d1   : > { %v1452_v21 = vadd.f32 %v1386_v31, %v1110_v9  ;;  %v5215_v9 = vld [vmem:[#allocation33_spill] sm:$0xff] }
 0x1d2   : > { %v2999_v60 = vpop.f32.mrf.mxu0  ;;  %3736 = vmatmul.msk.f32.gmra.mxu1 %vm215_vm1, %v4498_v62 }
 0x1d3   : > { %v4906_v2 = vadd.f32 %v1727_v57, %v1452_v21  ;;  %3801 = vmatmul.msk.f32.gmra.mxu2 %vm215_vm1, %v3768_v54 }
 0x1d4   : > { %3866 = vmatmul.msk.f32.gmra.mxu3 %vm215_vm1, %v4501_v10  ;;  %v5214_v10 = vld [vmem:[#allocation32_spill] sm:$0xff] }
 0x1d5   : > { %3931 = vmatmul.msk.f32.gmra.mxu0 %vm215_vm1, %v4532_v3 }
 0x1d6   : > { %v2317_v47 = vpop.f32.mrf.mxu2 }
 0x1d7   : > { %v2445_v48 = vadd.f32 %v2317_v47, %v2103_v24  ;;  %v2658_v63 = vpop.f32.mrf.mxu3  ;;  %v1978_v12 = vpop.f32.mrf.mxu1  ;;  %v3771_v47 = vld [vmem:[%s4027_s27 + $0x110] sm:$0xff] }
 0x1d8   : > { %v2104_v56 = vadd.f32 %v1978_v12, %v5214_v10  ;;  %v5216_v12 = vld [vmem:[#allocation34_spill] sm:$0xff] }
 0x1d9   : > { %v2786_v40 = vadd.f32 %v2658_v63, %v2445_v48 }
 0x1da   : > { %v3002_v49 = vpop.f32.mrf.mxu0  ;;  %3737 = vmatmul.msk.f32.gmra.mxu1 %vm215_vm1, %v4515_v61 }
 0x1db   : > { %v3127_v62 = vadd.f32 %v2999_v60, %v2786_v40  ;;  %3802 = vmatmul.msk.f32.gmra.mxu2 %vm215_vm1, %v3769_v7 }
 0x1dc   : > { %3867 = vmatmul.msk.f32.gmra.mxu3 %vm215_vm1, %v4518_v46 }
 0x1dd   : > { %3932 = vmatmul.msk.f32.gmra.mxu0 %vm215_vm1, %v4549_v13  ;;  %3223 = vst [vmem:[%s4921_s14] sm:$0xff] %v3127_v62  ;;  %v3293_v46 = vmul.f32 %v3127_v62, %v3127_v62 }
 0x1de   : > { %v2320_v11 = vpop.f32.mrf.mxu2 }
 0x1df   : > { %v2446_v35 = vadd.f32 %v2320_v11, %v2104_v56  ;;  %v2661_v42 = vpop.f32.mrf.mxu3  ;;  %v1981_v57 = vpop.f32.mrf.mxu1 }
 0x1e0   : > { %v2105_v31 = vadd.f32 %v1981_v57, %v5215_v9 }
 0x1e1   : > { %v2787_v19 = vadd.f32 %v2661_v42, %v2446_v35 }
 0x1e2   : > { %v3005_v17 = vpop.f32.mrf.mxu0  ;;  %3738 = vmatmul.msk.f32.gmra.mxu1 %vm215_vm1, %v4532_v3 }
 0x1e3   : > { %v3128_v61 = vadd.f32 %v3002_v49, %v2787_v19  ;;  %3803 = vmatmul.msk.f32.gmra.mxu2 %vm215_vm1, %v3770_v0 }
 0x1e4   : > { %3868 = vmatmul.msk.f32.gmra.mxu3 %vm215_vm1, %v4535_v4 }
 0x1e5   : > { %3933 = vmatmul.msk.f32.gmra.mxu0 %vm215_vm1, %v4566_v27  ;;  %3224 = vst [vmem:[%s4921_s14 + $0x8] sm:$0xff] %v3128_v61  ;;  %v3255_v51 = vadd.f32 %v3128_v61, %v3127_v62  ;;  %v3294_v54 = vmul.f32 %v3128_v61, %v3128_v61 }
 0x1e6   : > { %v2323_v21 = vpop.f32.mrf.mxu2 }
 0x1e7   : > { %v3325_v60 = vadd.f32 %v3294_v54, %v3293_v46  ;;  %v2447_v28 = vadd.f32 %v2323_v21, %v2105_v31  ;;  %v2664_v24 = vpop.f32.mrf.mxu3  ;;  %v1984_v3 = vpop.f32.mrf.mxu1 }
 0x1e8   : > { %v2106_v7 = vadd.f32 %v1984_v3, %v5216_v12 }
 0x1e9   : > { %v2788_v48 = vadd.f32 %v2664_v24, %v2447_v28 }
 0x1ea   : > { %v3008_v63 = vpop.f32.mrf.mxu0  ;;  %3739 = vmatmul.msk.f32.gmra.mxu1 %vm215_vm1, %v4549_v13  ;;  %v3772_v13 = vld [vmem:[%s4027_s27 + $0x120] sm:$0xff] }
 0x1eb   : > { %v3129_v4 = vadd.f32 %v3005_v17, %v2788_v48  ;;  %3804 = vmatmul.msk.f32.gmra.mxu2 %vm215_vm1, %v3771_v47 }
 0x1ec   : > { %3869 = vmatmul.msk.f32.gmra.mxu3 %vm215_vm1, %v4552_v33  ;;  %v5217_v33 = vld [vmem:[#allocation35_spill] sm:$0xff] }
 0x1ed   : > { %3934 = vmatmul.msk.f32.gmra.mxu0 %vm215_vm1, %v4583_v44  ;;  %3225 = vst [vmem:[%s4921_s14 + $0x10] sm:$0xff] %v3129_v4  ;;  %v3256_v40 = vadd.f32 %v3255_v51, %v3129_v4  ;;  %v3295_v49 = vmul.f32 %v3129_v4, %v3129_v4 }
 0x1ee   : > { %v2326_v62 = vpop.f32.mrf.mxu2 }
 0x1ef   : > { %v3326_v10 = vadd.f32 %v3325_v60, %v3295_v49  ;;  %v2448_v56 = vadd.f32 %v2326_v62, %v2106_v7  ;;  %v2667_v11 = vpop.f32.mrf.mxu3  ;;  %v1987_v35 = vpop.f32.mrf.mxu1 }
 0x1f0   : > { %v2107_v19 = vadd.f32 %v1987_v35, %v5217_v33 }
 0x1f1   : > { %v2789_v42 = vadd.f32 %v2667_v11, %v2448_v56 }
 0x1f2   : > { %v3011_v57 = vpop.f32.mrf.mxu0  ;;  %3740 = vmatmul.msk.f32.gmra.mxu1 %vm215_vm1, %v4566_v27  ;;  %v3773_v27 = vld [vmem:[%s4027_s27 + $0x128] sm:$0xff] }
 0x1f3   : > { %v3130_v0 = vadd.f32 %v3008_v63, %v2789_v42  ;;  %3805 = vmatmul.msk.f32.gmra.mxu2 %vm215_vm1, %v3772_v13 }
 0x1f4   : > { %3870 = vmatmul.msk.f32.gmra.mxu3 %vm215_vm1, %v4569_v58  ;;  %v5218_v58 = vld [vmem:[#allocation36_spill] sm:$0xff] }
 0x1f5   : > { %3935 = vmatmul.msk.f32.gmra.mxu0 %vm215_vm1, %v4600_v8  ;;  %3226 = vst [vmem:[%s4921_s14 + $0x18] sm:$0xff] %v3130_v0  ;;  %v3257_v17 = vadd.f32 %v3256_v40, %v3130_v0  ;;  %v3296_v61 = vmul.f32 %v3130_v0, %v3130_v0 }
 0x1f6   : > { %v2329_v46 = vpop.f32.mrf.mxu2 }
 0x1f7   : > { %v3327_v9 = vadd.f32 %v3326_v10, %v3296_v61  ;;  %v2449_v31 = vadd.f32 %v2329_v46, %v2107_v19  ;;  %v2670_v51 = vpop.f32.mrf.mxu3  ;;  %v1990_v54 = vpop.f32.mrf.mxu1 }
 0x1f8   : > { %v2108_v24 = vadd.f32 %v1990_v54, %v5218_v58 }
 0x1f9   : > { %v2790_v21 = vadd.f32 %v2670_v51, %v2449_v31 }
 0x1fa   : > { %v3014_v60 = vpop.f32.mrf.mxu0  ;;  %3741 = vmatmul.msk.f32.gmra.mxu1 %vm215_vm1, %v4583_v44  ;;  %v3774_v44 = vld [vmem:[%s4027_s27 + $0x138] sm:$0xff] }
 0x1fb   : > { %v3131_v28 = vadd.f32 %v3011_v57, %v2790_v21  ;;  %3806 = vmatmul.msk.f32.gmra.mxu2 %vm215_vm1, %v3773_v27 }
 0x1fc   : > { %3871 = vmatmul.msk.f32.gmra.mxu3 %vm215_vm1, %v4586_v26  ;;  %v5219_v26 = vld [vmem:[#allocation37_spill] sm:$0xff] }
 0x1fd   : > { %3936 = vmatmul.msk.f32.gmra.mxu0 %vm215_vm1, %v4617_v32  ;;  %3227 = vst [vmem:[%s4921_s14 + $0x20] sm:$0xff] %v3131_v28  ;;  %v3258_v3 = vadd.f32 %v3257_v17, %v3131_v28  ;;  %v3297_v47 = vmul.f32 %v3131_v28, %v3131_v28 }
 0x1fe   : > { %v2332_v48 = vpop.f32.mrf.mxu2 }
 0x1ff   : > { %v3328_v63 = vadd.f32 %v3327_v9, %v3297_v47  ;;  %v2450_v4 = vadd.f32 %v2332_v48, %v2108_v24  ;;  %v2673_v12 = vpop.f32.mrf.mxu3  ;;  %v1993_v7 = vpop.f32.mrf.mxu1 }
 0x200   : > { %v2109_v10 = vadd.f32 %v1993_v7, %v5219_v26  ;;  %v3777_v7 = vld [vmem:[%s4027_s27 + $0x158] sm:$0xff] }
 0x201   : > { %v2791_v40 = vadd.f32 %v2673_v12, %v2450_v4 }
 0x202   : > { %v3017_v49 = vpop.f32.mrf.mxu0  ;;  %3742 = vmatmul.msk.f32.gmra.mxu1 %vm215_vm1, %v4600_v8  ;;  %v3775_v8 = vld [vmem:[%s4027_s27 + $0x140] sm:$0xff] }
 0x203   : > { %v3132_v62 = vadd.f32 %v3014_v60, %v2791_v40  ;;  %3807 = vmatmul.msk.f32.gmra.mxu2 %vm215_vm1, %v3774_v44 }
 0x204   : > { %3872 = vmatmul.msk.f32.gmra.mxu3 %vm215_vm1, %v4603_v6  ;;  %v5220_v6 = vld [vmem:[#allocation38_spill] sm:$0xff] }
 0x205   : > { %3937 = vmatmul.msk.f32.gmra.mxu0 %vm215_vm1, %v4634_v45  ;;  %3228 = vst [vmem:[%s4921_s14 + $0x28] sm:$0xff] %v3132_v62  ;;  %v3259_v56 = vadd.f32 %v3258_v3, %v3132_v62  ;;  %v3298_v11 = vmul.f32 %v3132_v62, %v3132_v62 }
 0x206   : > { %v2335_v35 = vpop.f32.mrf.mxu2 }
 0x207   : > { %v3329_v13 = vadd.f32 %v3328_v63, %v3298_v11  ;;  %v2451_v42 = vadd.f32 %v2335_v35, %v2109_v10  ;;  %v2676_v57 = vpop.f32.mrf.mxu3  ;;  %v1996_v0 = vpop.f32.mrf.mxu1 }
 0x208   : > { %v2110_v61 = vadd.f32 %v1996_v0, %v5220_v6  ;;  %v3778_v0 = vld [vmem:[%s4027_s27 + $0x168] sm:$0xff] }
 0x209   : > { %v2792_v33 = vadd.f32 %v2676_v57, %v2451_v42  ;;  %v3713_v57 = vld [vmem:[%s4027_s27 + $0x152] sm:$0xff] }
 0x20a   : > { %v3020_v19 = vpop.f32.mrf.mxu0  ;;  %3743 = vmatmul.msk.f32.gmra.mxu1 %vm215_vm1, %v4617_v32  ;;  %v3776_v32 = vld [vmem:[%s4027_s27 + $0x150] sm:$0xff] }
 0x20b   : > { %v3133_v17 = vadd.f32 %v3017_v49, %v2792_v33  ;;  %3808 = vmatmul.msk.f32.gmra.mxu2 %vm215_vm1, %v3775_v8  ;;  %v5223_v49 = vld [vmem:[#allocation40_spill] sm:$0xff] }
 0x20c   : > { %3873 = vmatmul.msk.f32.gmra.mxu3 %vm215_vm1, %v4620_v16 }
 0x20d   : > { %3938 = vmatmul.msk.f32.gmra.mxu0 %vm215_vm1, %v4651_v59  ;;  %3229 = vst [vmem:[%s4921_s14 + $0x30] sm:$0xff] %v3133_v17  ;;  %v3260_v46 = vadd.f32 %v3259_v56, %v3133_v17  ;;  %v3299_v9 = vmul.f32 %v3133_v17, %v3133_v17  ;;  %v5221_v59 = vld [vmem:[#allocation39_spill] sm:$0xff]  ;;  %v5225_v17 = vld [vmem:[#allocation41_spill] sm:$0xff] }
 0x20e   : > { %v2338_v31 = vpop.f32.mrf.mxu2 }
 0x20f   : > { %v3330_v51 = vadd.f32 %v3329_v13, %v3299_v9  ;;  %v2452_v54 = vadd.f32 %v2338_v31, %v2110_v61  ;;  %v2679_v27 = vpop.f32.mrf.mxu3  ;;  %v1999_v21 = vpop.f32.mrf.mxu1 }
 0x210   : > { %v2111_v58 = vadd.f32 %v1999_v21, %v5221_v59  ;;  %v3714_v21 = vld [vmem:[%s4027_s27 + $0x15a] sm:$0xff] }
 0x211   : > { %v2793_v60 = vadd.f32 %v2679_v27, %v2452_v54 }
 0x212   : > { %v3023_v28 = vpop.f32.mrf.mxu0  ;;  %3744 = vmatmul.msk.f32.gmra.mxu1 %vm215_vm1, %v4634_v45  ;;  %v3712_v45 = vld [vmem:[%s4027_s27 + $0x142] sm:$0xff] }
 0x213   : > { %v3134_v16 = vadd.f32 %v3020_v19, %v2793_v60  ;;  %3809 = vmatmul.msk.f32.gmra.mxu2 %vm215_vm1, %v3776_v32  ;;  %v5224_v19 = vld [vmem:[#allocation42_spill] sm:$0xff]  ;;  %v3779_v32 = vld [vmem:[%s4027_s27 + $0x170] sm:$0xff] }
 0x214   : > { %3874 = vmatmul.msk.f32.gmra.mxu3 %vm215_vm1, %v4637_v14 }
 0x215   : > { %3939 = vmatmul.msk.f32.gmra.mxu0 %vm215_vm1, %v4668_v1  ;;  %3230 = vst [vmem:[%s4921_s14 + $0x38] sm:$0xff] %v3134_v16  ;;  %v3261_v24 = vadd.f32 %v3260_v46, %v3134_v16  ;;  %v3300_v3 = vmul.f32 %v3134_v16, %v3134_v16  ;;  %v5222_v1 = vld [vmem:[#allocation44_spill] sm:$0xff]  ;;  %v3909_v16 = vld [vmem:[%s4027_s27 + $0x172] sm:$0xff] }
 0x216   : > { %v2341_v47 = vpop.f32.mrf.mxu2 }
 0x217   : > { %v3331_v48 = vadd.f32 %v3330_v51, %v3300_v3  ;;  %v2453_v63 = vadd.f32 %v2341_v47, %v2111_v58  ;;  %v2682_v4 = vpop.f32.mrf.mxu3  ;;  %v2002_v12 = vpop.f32.mrf.mxu1 }
 0x218   : > { %v2112_v62 = vadd.f32 %v2002_v12, %v5223_v49  ;;  %v5228_v49 = vld [vmem:[#allocation45_spill] sm:$0xff] }
 0x219   : > { %v2794_v44 = vadd.f32 %v2682_v4, %v2453_v63 }
 0x21a   : > { %v3026_v40 = vpop.f32.mrf.mxu0  ;;  %3745 = vmatmul.msk.f32.gmra.mxu1 %vm215_vm1, %v3712_v45  ;;  %v3715_v45 = vld [vmem:[%s4027_s27 + $0x16a] sm:$0xff] }
 0x21b   : > { %v3135_v14 = vadd.f32 %v3023_v28, %v2794_v44  ;;  %3810 = vmatmul.msk.f32.gmra.mxu2 %vm215_vm1, %v3777_v7  ;;  %v3780_v7 = vld [vmem:[%s4027_s27 + $0x180] sm:$0xff] }
 0x21c   : > { %3875 = vmatmul.msk.f32.gmra.mxu3 %vm215_vm1, %v4654_v18 }
 0x21d   : > { %3940 = vmatmul.msk.f32.gmra.mxu0 %vm215_vm1, %v5222_v1  ;;  %3231 = vst [vmem:[%s4921_s14 + $0x40] sm:$0xff] %v3135_v14  ;;  %v3262_v26 = vadd.f32 %v3261_v24, %v3135_v14  ;;  %v3301_v10 = vmul.f32 %v3135_v14, %v3135_v14  ;;  %v3910_v14 = vld [vmem:[%s4027_s27 + $0x182] sm:$0xff]  ;;  %v5227_v1 = vld [vmem:[#allocation46_spill] sm:$0xff] }
 0x21e   : > { %v2344_v56 = vpop.f32.mrf.mxu2 }
 0x21f   : > { %v3332_v11 = vadd.f32 %v3331_v48, %v3301_v10  ;;  %v2454_v35 = vadd.f32 %v2344_v56, %v2112_v62  ;;  %v2685_v13 = vpop.f32.mrf.mxu3  ;;  %v2005_v42 = vpop.f32.mrf.mxu1 }
 0x220   : > { %v2113_v6 = vadd.f32 %v2005_v42, %v5225_v17  ;;  %v5229_v17 = vld [vmem:[#allocation47_spill] sm:$0xff] }
 0x221   : > { %v2795_v8 = vadd.f32 %v2685_v13, %v2454_v35 }
 0x222   : > { %v3029_v33 = vpop.f32.mrf.mxu0  ;;  %3746 = vmatmul.msk.f32.gmra.mxu1 %vm215_vm1, %v3713_v57  ;;  %v3781_v57 = vld [vmem:[%s4027_s27 + $0x188] sm:$0xff] }
 0x223   : > { %v3136_v18 = vadd.f32 %v3026_v40, %v2795_v8  ;;  %3811 = vmatmul.msk.f32.gmra.mxu2 %vm215_vm1, %v3778_v0  ;;  %v3846_v8 = vld [vmem:[%s4027_s27 + $0x189] sm:$0xff] }
 0x224   : > { %3876 = vmatmul.msk.f32.gmra.mxu3 %vm215_vm1, %v5224_v19 }
 0x225   : > { %3941 = vmatmul.msk.f32.gmra.mxu0 %vm215_vm1, %v4702_v15  ;;  %3232 = vst [vmem:[%s4921_s14 + $0x48] sm:$0xff] %v3136_v18  ;;  %v3263_v61 = vadd.f32 %v3262_v26, %v3136_v18  ;;  %v3302_v46 = vmul.f32 %v3136_v18, %v3136_v18  ;;  %v5226_v15 = vld [vmem:[#allocation43_spill] sm:$0xff]  ;;  %v3911_v18 = vld [vmem:[%s4027_s27 + $0x18a] sm:$0xff] }
 0x226   : > { %v2347_v9 = vpop.f32.mrf.mxu2 }
 0x227   : > { %v3333_v31 = vadd.f32 %v3332_v11, %v3302_v46  ;;  %v2455_v51 = vadd.f32 %v2347_v9, %v2113_v6  ;;  %v2688_v54 = vpop.f32.mrf.mxu3  ;;  %v2008_v27 = vpop.f32.mrf.mxu1 }
 0x228   : > { %v2114_v58 = vadd.f32 %v2008_v27, %v5226_v15 }
 0x229   : > { %v2796_v60 = vadd.f32 %v2688_v54, %v2455_v51 }
 0x22a   : > { %v3032_v28 = vpop.f32.mrf.mxu0  ;;  %3747 = vmatmul.msk.f32.gmra.mxu1 %vm215_vm1, %v3714_v21  ;;  %v3782_v21 = vld [vmem:[%s4027_s27 + $0x198] sm:$0xff] }
 0x22b   : > { %v3137_v59 = vadd.f32 %v3029_v33, %v2796_v60  ;;  %3812 = vmatmul.msk.f32.gmra.mxu2 %vm215_vm1, %v3779_v32  ;;  %v3847_v60 = vld [vmem:[%s4027_s27 + $0x199] sm:$0xff] }
 0x22c   : > { %3877 = vmatmul.msk.f32.gmra.mxu3 %vm215_vm1, %v4688_v29 }
 0x22d   : > { %3942 = vmatmul.msk.f32.gmra.mxu0 %vm215_vm1, %v3909_v16  ;;  %3233 = vst [vmem:[%s4921_s14 + $0x50] sm:$0xff] %v3137_v59  ;;  %v3264_v24 = vadd.f32 %v3263_v61, %v3137_v59  ;;  %v3303_v3 = vmul.f32 %v3137_v59, %v3137_v59 }
 0x22e   : > { %v2350_v47 = vpop.f32.mrf.mxu2 }
 0x22f   : > { %v3334_v48 = vadd.f32 %v3333_v31, %v3303_v3  ;;  %v2456_v63 = vadd.f32 %v2350_v47, %v2114_v58  ;;  %v2691_v4 = vpop.f32.mrf.mxu3  ;;  %v2011_v12 = vpop.f32.mrf.mxu1 }
 0x230   : > { %v2115_v62 = vadd.f32 %v2011_v12, %v5228_v49  ;;  %v3783_v12 = vld [vmem:[%s4027_s27 + $0x1a0] sm:$0xff] }
 0x231   : > { %v2797_v44 = vadd.f32 %v2691_v4, %v2456_v63 }
 0x232   : > { %v3035_v40 = vpop.f32.mrf.mxu0  ;;  %3748 = vmatmul.msk.f32.gmra.mxu1 %vm215_vm1, %v3715_v45 }
 0x233   : > { %v3138_v29 = vadd.f32 %v3032_v28, %v2797_v44  ;;  %3813 = vmatmul.msk.f32.gmra.mxu2 %vm215_vm1, %v3780_v7  ;;  %v3848_v7 = vld [vmem:[%s4027_s27 + $0x1a1] sm:$0xff] }
 0x234   : > { %3878 = vmatmul.msk.f32.gmra.mxu3 %vm215_vm1, %v5227_v1 }
 0x235   : > { %3943 = vmatmul.msk.f32.gmra.mxu0 %vm215_vm1, %v3910_v14  ;;  %3234 = vst [vmem:[%s4921_s14 + $0x58] sm:$0xff] %v3138_v29  ;;  %v3265_v26 = vadd.f32 %v3264_v24, %v3138_v29  ;;  %v3304_v10 = vmul.f32 %v3138_v29, %v3138_v29 }
 0x236   : > { %v2353_v56 = vpop.f32.mrf.mxu2 }
 0x237   : > { %v3335_v11 = vadd.f32 %v3334_v48, %v3304_v10  ;;  %v2457_v35 = vadd.f32 %v2353_v56, %v2115_v62  ;;  %v2694_v13 = vpop.f32.mrf.mxu3  ;;  %v2014_v42 = vpop.f32.mrf.mxu1 }
 0x238   : > { %v2116_v6 = vadd.f32 %v2014_v42, %v5229_v17 }
 0x239   : > { %v2798_v0 = vadd.f32 %v2694_v13, %v2457_v35 }
 0x23a   : > { %v3038_v33 = vpop.f32.mrf.mxu0  ;;  %3749 = vmatmul.msk.f32.gmra.mxu1 %vm215_vm1, %v3909_v16  ;;  %v3912_v16 = vld [vmem:[%s4027_s27 + $0x19a] sm:$0xff] }
 0x23b   : > { %v3139_v19 = vadd.f32 %v3035_v40, %v2798_v0  ;;  %3814 = vmatmul.msk.f32.gmra.mxu2 %vm215_vm1, %v3781_v57  ;;  %v3913_v40 = vld [vmem:[%s4027_s27 + $0x1a2] sm:$0xff] }
 0x23c   : > { %3879 = vmatmul.msk.f32.gmra.mxu3 %vm215_vm1, %v3846_v8 }
 0x23d   : > { %3944 = vmatmul.msk.f32.gmra.mxu0 %vm215_vm1, %v3911_v18  ;;  %3235 = vst [vmem:[%s4921_s14 + $0x60] sm:$0xff] %v3139_v19  ;;  %v3266_v61 = vadd.f32 %v3265_v26, %v3139_v19  ;;  %v3305_v46 = vmul.f32 %v3139_v19, %v3139_v19 }
 0x23e   : > { %v2356_v9 = vpop.f32.mrf.mxu2 }
 0x23f   : > { %v3336_v31 = vadd.f32 %v3335_v11, %v3305_v46  ;;  %v2458_v51 = vadd.f32 %v2356_v9, %v2116_v6  ;;  %v2697_v54 = vpop.f32.mrf.mxu3  ;;  %v2017_v27 = vpop.f32.mrf.mxu1 }
 0x240   : > { %v2117_v15 = vadd.f32 %v2017_v27, %v4721_v22 }
 0x241   : > { %v2799_v32 = vadd.f32 %v2697_v54, %v2458_v51 }
 0x242   : > { %v3041_v28 = vpop.f32.mrf.mxu0  ;;  %3750 = vmatmul.msk.f32.gmra.mxu1 %vm215_vm1, %v3910_v14 }
 0x243   : > { %v3140_v59 = vadd.f32 %v3038_v33, %v2799_v32  ;;  %3815 = vmatmul.msk.f32.gmra.mxu2 %vm215_vm1, %v3782_v21 }
 0x244   : > { %3880 = vmatmul.msk.f32.gmra.mxu3 %vm215_vm1, %v3847_v60 }
 0x245   : > { %3945 = vmatmul.msk.f32.gmra.mxu0 %vm215_vm1, %v3912_v16  ;;  %3236 = vst [vmem:[%s4921_s14 + $0x68] sm:$0xff] %v3140_v59  ;;  %v3267_v58 = vadd.f32 %v3266_v61, %v3140_v59  ;;  %v3306_v24 = vmul.f32 %v3140_v59, %v3140_v59 }
 0x246   : > { %v2359_v3 = vpop.f32.mrf.mxu2 }
 0x247   : > { %v3337_v47 = vadd.f32 %v3336_v31, %v3306_v24  ;;  %v2459_v48 = vadd.f32 %v2359_v3, %v2117_v15  ;;  %v2700_v63 = vpop.f32.mrf.mxu3  ;;  %v2020_v4 = vpop.f32.mrf.mxu1 }
 0x248   : > { %v2118_v22 = vadd.f32 %v2020_v4, %v4729_v37 }
 0x249   : > { %v2800_v45 = vadd.f32 %v2700_v63, %v2459_v48 }
 0x24a   : > { %v3044_v44 = vpop.f32.mrf.mxu0  ;;  %3751 = vmatmul.msk.f32.gmra.mxu1 %vm215_vm1, %v3911_v18 }
 0x24b   : > { %v3141_v14 = vadd.f32 %v3041_v28, %v2800_v45  ;;  %3816 = vmatmul.msk.f32.gmra.mxu2 %vm215_vm1, %v3783_v12 }
 0x24c   : > { %3881 = vmatmul.msk.f32.gmra.mxu3 %vm215_vm1, %v3848_v7 }
 0x24d   : > { %3946 = vmatmul.msk.f32.gmra.mxu0 %vm215_vm1, %v3913_v40  ;;  %3237 = vst [vmem:[%s4921_s14 + $0x70] sm:$0xff] %v3141_v14  ;;  %v3268_v29 = vadd.f32 %v3267_v58, %v3141_v14  ;;  %v3307_v1 = vmul.f32 %v3141_v14, %v3141_v14 }
 0x24e   : > { %v2362_v49 = vpop.f32.mrf.mxu2 }
 0x24f   : > { %v3338_v62 = vadd.f32 %v3337_v47, %v3307_v1  ;;  %v2460_v26 = vadd.f32 %v2362_v49, %v2118_v22  ;;  %v2703_v10 = vpop.f32.mrf.mxu3  ;;  %v2023_v56 = vpop.f32.mrf.mxu1 }
 0x250   : > { %v2119_v42 = vadd.f32 %v2023_v56, %v4740_v38 }
 0x251   : > { %v2801_v11 = vadd.f32 %v2703_v10, %v2460_v26 }
 0x252   : > { %v3047_v35 = vpop.f32.mrf.mxu0 }
 0x253   : > { %v3142_v13 = vadd.f32 %v3044_v44, %v2801_v11 }
 0x255   : > { %3238 = vst [vmem:[%s4921_s14 + $0x78] sm:$0xff] %v3142_v13  ;;  %v3269_v57 = vadd.f32 %v3268_v29, %v3142_v13  ;;  %v3308_v0 = vmul.f32 %v3142_v13, %v3142_v13 }
 0x256   : > { %v2365_v8 = vpop.f32.mrf.mxu2 }
 0x257   : > { %v3339_v33 = vadd.f32 %v3338_v62, %v3308_v0  ;;  %v2461_v37 = vadd.f32 %v2365_v8, %v2119_v42  ;;  %v2706_v18 = vpop.f32.mrf.mxu3  ;;  %v2026_v19 = vpop.f32.mrf.mxu1 }
 0x258   : > { %v2120_v46 = vadd.f32 %v2026_v19, %v4751_v41 }
 0x259   : > { %v2802_v17 = vadd.f32 %v2706_v18, %v2461_v37 }
 0x25a   : > { %v3050_v6 = vpop.f32.mrf.mxu0 }
 0x25b   : > { %v3143_v61 = vadd.f32 %v3047_v35, %v2802_v17 }
 0x25d   : > { %3239 = vst [vmem:[%s4921_s14 + $0x80] sm:$0xff] %v3143_v61  ;;  %v3270_v9 = vadd.f32 %v3269_v57, %v3143_v61  ;;  %v3309_v31 = vmul.f32 %v3143_v61, %v3143_v61 }
 0x25e   : > { %v2368_v51 = vpop.f32.mrf.mxu2 }
 0x25f   : > { %v3340_v54 = vadd.f32 %v3339_v33, %v3309_v31  ;;  %v2462_v38 = vadd.f32 %v2368_v51, %v2120_v46  ;;  %v2709_v27 = vpop.f32.mrf.mxu3  ;;  %v2029_v21 = vpop.f32.mrf.mxu1 }
 0x260   : > { %v2121_v16 = vadd.f32 %v2029_v21, %v4762_v20 }
 0x261   : > { %v2803_v32 = vadd.f32 %v2709_v27, %v2462_v38 }
 0x262   : > { %v3053_v60 = vpop.f32.mrf.mxu0 }
 0x263   : > { %v3144_v28 = vadd.f32 %v3050_v6, %v2803_v32 }
 0x265   : > { %3240 = vst [vmem:[%s4921_s14 + $0x88] sm:$0xff] %v3144_v28  ;;  %v3271_v59 = vadd.f32 %v3270_v9, %v3144_v28  ;;  %v3310_v15 = vmul.f32 %v3144_v28, %v3144_v28 }
 0x266   : > { %v2371_v58 = vpop.f32.mrf.mxu2 }
 0x267   : > { %v3341_v24 = vadd.f32 %v3340_v54, %v3310_v15  ;;  %v2463_v41 = vadd.f32 %v2371_v58, %v2121_v16  ;;  %v2712_v3 = vpop.f32.mrf.mxu3  ;;  %v2032_v47 = vpop.f32.mrf.mxu1 }
 0x268   : > { %v2122_v12 = vadd.f32 %v2032_v47, %v4774_v53 }
 0x269   : > { %v2804_v48 = vadd.f32 %v2712_v3, %v2463_v41 }
 0x26a   : > { %v3056_v63 = vpop.f32.mrf.mxu0 }
 0x26b   : > { %v3145_v4 = vadd.f32 %v3053_v60, %v2804_v48 }
 0x26d   : > { %3241 = vst [vmem:[%s4921_s14 + $0x90] sm:$0xff] %v3145_v4  ;;  %v3272_v45 = vadd.f32 %v3271_v59, %v3145_v4  ;;  %v3311_v7 = vmul.f32 %v3145_v4, %v3145_v4 }
 0x26e   : > { %v2374_v44 = vpop.f32.mrf.mxu2 }
 0x26f   : > { %v3342_v40 = vadd.f32 %v3341_v24, %v3311_v7  ;;  %v2464_v20 = vadd.f32 %v2374_v44, %v2122_v12  ;;  %v2715_v14 = vpop.f32.mrf.mxu3  ;;  %v2035_v22 = vpop.f32.mrf.mxu1 }
 0x270   : > { %v2123_v62 = vadd.f32 %v2035_v22, %v4785_v43 }
 0x271   : > { %v2805_v29 = vadd.f32 %v2715_v14, %v2464_v20 }
 0x272   : > { %v3059_v1 = vpop.f32.mrf.mxu0 }
 0x273   : > { %v3146_v49 = vadd.f32 %v3056_v63, %v2805_v29 }
 0x275   : > { %3242 = vst [vmem:[%s4921_s14 + $0x98] sm:$0xff] %v3146_v49  ;;  %v3273_v26 = vadd.f32 %v3272_v45, %v3146_v49  ;;  %v3312_v10 = vmul.f32 %v3146_v49, %v3146_v49 }
 0x276   : > { %v2377_v56 = vpop.f32.mrf.mxu2 }
 0x277   : > { %v3343_v11 = vadd.f32 %v3342_v40, %v3312_v10  ;;  %v2465_v53 = vadd.f32 %v2377_v56, %v2123_v62  ;;  %v2718_v35 = vpop.f32.mrf.mxu3  ;;  %v2038_v13 = vpop.f32.mrf.mxu1 }
 0x278   : > { %v2124_v8 = vadd.f32 %v2038_v13, %v4796_v36 }
 0x279   : > { %v2806_v42 = vadd.f32 %v2718_v35, %v2465_v53 }
 0x27a   : > { %v3062_v57 = vpop.f32.mrf.mxu0 }
 0x27b   : > { %v3147_v0 = vadd.f32 %v3059_v1, %v2806_v42 }
 0x27d   : > { %3243 = vst [vmem:[%s4921_s14 + $0xa0] sm:$0xff] %v3147_v0  ;;  %v3274_v33 = vadd.f32 %v3273_v26, %v3147_v0  ;;  %v3313_v37 = vmul.f32 %v3147_v0, %v3147_v0 }
 0x27e   : > { %v2380_v18 = vpop.f32.mrf.mxu2 }
 0x27f   : > { %v3344_v19 = vadd.f32 %v3343_v11, %v3313_v37  ;;  %v2466_v43 = vadd.f32 %v2380_v18, %v2124_v8  ;;  %v2721_v17 = vpop.f32.mrf.mxu3  ;;  %v2041_v6 = vpop.f32.mrf.mxu1 }
 0x280   : > { %v2125_v31 = vadd.f32 %v2041_v6, %v4807_v39 }
 0x281   : > { %v2807_v61 = vadd.f32 %v2721_v17, %v2466_v43 }
 0x282   : > { %v3065_v46 = vpop.f32.mrf.mxu0 }
 0x283   : > { %v3148_v9 = vadd.f32 %v3062_v57, %v2807_v61 }
 0x285   : > { %3244 = vst [vmem:[%s4921_s14 + $0xa8] sm:$0xff] %v3148_v9  ;;  %v3275_v51 = vadd.f32 %v3274_v33, %v3148_v9  ;;  %v3314_v54 = vmul.f32 %v3148_v9, %v3148_v9 }
 0x286   : > { %v2383_v38 = vpop.f32.mrf.mxu2 }
 0x287   : > { %v3345_v27 = vadd.f32 %v3344_v19, %v3314_v54  ;;  %v2467_v36 = vadd.f32 %v2383_v38, %v2125_v31  ;;  %v2724_v21 = vpop.f32.mrf.mxu3  ;;  %v2044_v32 = vpop.f32.mrf.mxu1 }
 0x288   : > { %v2126_v59 = vadd.f32 %v2044_v32, %v4818_v50 }
 0x289   : > { %v2808_v60 = vadd.f32 %v2724_v21, %v2467_v36 }
 0x28a   : > { %v3068_v28 = vpop.f32.mrf.mxu0 }
 0x28b   : > { %v3149_v16 = vadd.f32 %v3065_v46, %v2808_v60 }
 0x28d   : > { %3245 = vst [vmem:[%s4921_s14 + $0xb0] sm:$0xff] %v3149_v16  ;;  %v3276_v15 = vadd.f32 %v3275_v51, %v3149_v16  ;;  %v3315_v58 = vmul.f32 %v3149_v16, %v3149_v16 }
 0x28e   : > { %v2386_v24 = vpop.f32.mrf.mxu2 }
 0x28f   : > { %v3346_v41 = vadd.f32 %v3345_v27, %v3315_v58  ;;  %v2468_v39 = vadd.f32 %v2386_v24, %v2126_v59  ;;  %v2727_v3 = vpop.f32.mrf.mxu3  ;;  %v2047_v47 = vpop.f32.mrf.mxu1 }
 0x290   : > { %v2127_v12 = vadd.f32 %v2047_v47, %v4829_v30 }
 0x291   : > { %v2809_v48 = vadd.f32 %v2727_v3, %v2468_v39 }
 0x292   : > { %v3071_v63 = vpop.f32.mrf.mxu0 }
 0x293   : > { %v3150_v4 = vadd.f32 %v3068_v28, %v2809_v48 }
 0x295   : > { %3246 = vst [vmem:[%s4921_s14 + $0xb8] sm:$0xff] %v3150_v4  ;;  %v3277_v45 = vadd.f32 %v3276_v15, %v3150_v4  ;;  %v3316_v7 = vmul.f32 %v3150_v4, %v3150_v4 }
 0x296   : > { %v2389_v44 = vpop.f32.mrf.mxu2 }
 0x297   : > { %v3347_v40 = vadd.f32 %v3346_v41, %v3316_v7  ;;  %v2469_v50 = vadd.f32 %v2389_v44, %v2127_v12  ;;  %v2730_v20 = vpop.f32.mrf.mxu3  ;;  %v2050_v14 = vpop.f32.mrf.mxu1 }
 0x298   : > { %v2128_v49 = vadd.f32 %v2050_v14, %v4840_v23 }
 0x299   : > { %v2810_v22 = vadd.f32 %v2730_v20, %v2469_v50 }
 0x29a   : > { %v3074_v29 = vpop.f32.mrf.mxu0 }
 0x29b   : > { %v3151_v1 = vadd.f32 %v3071_v63, %v2810_v22 }
 0x29d   : > { %3247 = vst [vmem:[%s4921_s14 + $0xc0] sm:$0xff] %v3151_v1  ;;  %v3278_v62 = vadd.f32 %v3277_v45, %v3151_v1  ;;  %v3317_v26 = vmul.f32 %v3151_v1, %v3151_v1 }
 0x29e   : > { %v2392_v10 = vpop.f32.mrf.mxu2 }
 0x29f   : > { %v3348_v56 = vadd.f32 %v3347_v40, %v3317_v26  ;;  %v2470_v30 = vadd.f32 %v2392_v10, %v2128_v49  ;;  %v2733_v11 = vpop.f32.mrf.mxu3  ;;  %v2053_v53 = vpop.f32.mrf.mxu1 }
 0x2a0   : > { %v2129_v57 = vadd.f32 %v2053_v53, %v4851_v34 }
 0x2a1   : > { %v2811_v35 = vadd.f32 %v2733_v11, %v2470_v30 }
 0x2a2   : > { %v3077_v13 = vpop.f32.mrf.mxu0 }
 0x2a3   : > { %v3152_v42 = vadd.f32 %v3074_v29, %v2811_v35 }
 0x2a5   : > { %3248 = vst [vmem:[%s4921_s14 + $0xc8] sm:$0xff] %v3152_v42  ;;  %v3279_v0 = vadd.f32 %v3278_v62, %v3152_v42  ;;  %v3318_v8 = vmul.f32 %v3152_v42, %v3152_v42 }
 0x2a6   : > { %v2395_v33 = vpop.f32.mrf.mxu2 }
 0x2a7   : > { %v3349_v37 = vadd.f32 %v3348_v56, %v3318_v8  ;;  %v2471_v23 = vadd.f32 %v2395_v33, %v2129_v57  ;;  %v2736_v18 = vpop.f32.mrf.mxu3  ;;  %v2056_v19 = vpop.f32.mrf.mxu1 }
 0x2a8   : > { %v2130_v61 = vadd.f32 %v2056_v19, %v4862_v25 }
 0x2a9   : > { %v2812_v43 = vadd.f32 %v2736_v18, %v2471_v23 }
 0x2aa   : > { %v3080_v17 = vpop.f32.mrf.mxu0 }
 0x2ab   : > { %v3153_v6 = vadd.f32 %v3077_v13, %v2812_v43 }
 0x2ad   : > { %3249 = vst [vmem:[%s4921_s14 + $0xd0] sm:$0xff] %v3153_v6  ;;  %v3280_v46 = vadd.f32 %v3279_v0, %v3153_v6  ;;  %v3319_v9 = vmul.f32 %v3153_v6, %v3153_v6 }
 0x2ae   : > { %v2398_v31 = vpop.f32.mrf.mxu2 }
 0x2af   : > { %v3350_v51 = vadd.f32 %v3349_v37, %v3319_v9  ;;  %v2472_v34 = vadd.f32 %v2398_v31, %v2130_v61  ;;  %v2739_v54 = vpop.f32.mrf.mxu3  ;;  %v2059_v38 = vpop.f32.mrf.mxu1 }
 0x2b0   : > { %v2131_v32 = vadd.f32 %v2059_v38, %v4873_v5 }
 0x2b1   : > { %v2813_v27 = vadd.f32 %v2739_v54, %v2472_v34 }
 0x2b2   : > { %v3083_v36 = vpop.f32.mrf.mxu0 }
 0x2b3   : > { %v3154_v21 = vadd.f32 %v3080_v17, %v2813_v27 }
 0x2b5   : > { %3250 = vst [vmem:[%s4921_s14 + $0xd8] sm:$0xff] %v3154_v21  ;;  %v3281_v60 = vadd.f32 %v3280_v46, %v3154_v21  ;;  %v3320_v28 = vmul.f32 %v3154_v21, %v3154_v21 }
 0x2b6   : > { %v2401_v16 = vpop.f32.mrf.mxu2 }
 0x2b7   : > { %v3351_v59 = vadd.f32 %v3350_v51, %v3320_v28  ;;  %v2473_v25 = vadd.f32 %v2401_v16, %v2131_v32  ;;  %v2742_v15 = vpop.f32.mrf.mxu3  ;;  %v2062_v58 = vpop.f32.mrf.mxu1 }
 0x2b8   : > { %v2132_v3 = vadd.f32 %v2062_v58, %v4884_v55 }
 0x2b9   : > { %v2814_v24 = vadd.f32 %v2742_v15, %v2473_v25 }
 0x2ba   : > { %v3086_v39 = vpop.f32.mrf.mxu0 }
 0x2bb   : > { %v3155_v41 = vadd.f32 %v3083_v36, %v2814_v24 }
 0x2bd   : > { %3251 = vst [vmem:[%s4921_s14 + $0xe0] sm:$0xff] %v3155_v41  ;;  %v3282_v47 = vadd.f32 %v3281_v60, %v3155_v41  ;;  %v3321_v48 = vmul.f32 %v3155_v41, %v3155_v41 }
 0x2be   : > { %v2404_v63 = vpop.f32.mrf.mxu2 }
 0x2bf   : > { %v3352_v4 = vadd.f32 %v3351_v59, %v3321_v48  ;;  %v2474_v5 = vadd.f32 %v2404_v63, %v2132_v3  ;;  %v2745_v12 = vpop.f32.mrf.mxu3  ;;  %v2065_v45 = vpop.f32.mrf.mxu1 }
 0x2c0   : > { %v2133_v40 = vadd.f32 %v2065_v45, %v4895_v52 }
 0x2c1   : > { %v2815_v7 = vadd.f32 %v2745_v12, %v2474_v5 }
 0x2c2   : > { %v3089_v22 = vpop.f32.mrf.mxu0 }
 0x2c3   : > { %v3156_v44 = vadd.f32 %v3086_v39, %v2815_v7 }
 0x2c5   : > { %3252 = vst [vmem:[%s4921_s14 + $0xe8] sm:$0xff] %v3156_v44  ;;  %v3283_v50 = vadd.f32 %v3282_v47, %v3156_v44  ;;  %v3322_v20 = vmul.f32 %v3156_v44, %v3156_v44 }
 0x2c6   : > { %v2407_v14 = vpop.f32.mrf.mxu2 }
 0x2c7   : > { %v3353_v29 = vadd.f32 %v3352_v4, %v3322_v20  ;;  %v2475_v55 = vadd.f32 %v2407_v14, %v2133_v40  ;;  %v2748_v1 = vpop.f32.mrf.mxu3  ;;  %v2068_v62 = vpop.f32.mrf.mxu1 }
 0x2c8   : > { %v2134_v10 = vadd.f32 %v2068_v62, %v4906_v2 }
 0x2c9   : > { %v2816_v49 = vadd.f32 %v2748_v1, %v2475_v55 }
 0x2ca   : > { %v3092_v13 = vpop.f32.mrf.mxu0 }
 0x2cb   : > { %v3157_v26 = vadd.f32 %v3089_v22, %v2816_v49 }
 0x2cd   : > { %3253 = vst [vmem:[%s4921_s14 + $0xf0] sm:$0xff] %v3157_v26  ;;  %v3284_v56 = vadd.f32 %v3283_v50, %v3157_v26  ;;  %v3323_v30 = vmul.f32 %v3157_v26, %v3157_v26 }
 0x2ce   : > { %v2410_v11 = vpop.f32.mrf.mxu2 }
 0x2cf   : > { %v3354_v52 = vadd.f32 %v3353_v29, %v3323_v30  ;;  %v2476_v53 = vadd.f32 %v2410_v11, %v2134_v10  ;;  %v2751_v35 = vpop.f32.mrf.mxu3 }
 0x2d1   : > { %v2817_v42 = vadd.f32 %v2751_v35, %v2476_v53 }
 0x2d3   : > { %v3158_v57 = vadd.f32 %v3092_v13, %v2817_v42 }
 0x2d5   : > { %3254 = vst [vmem:[%s4921_s14 + $0xf8] sm:$0xff] %v3158_v57  ;;  %v3285_v0 = vadd.f32 %v3284_v56, %v3158_v57  ;;  %v3324_v8 = vmul.f32 %v3158_v57, %v3158_v57 }
 0x2d7   : > { %v3286_v33 = vrot.slane %v3285_v0, 4  ;;  %v3355_v37 = vadd.f32 %v3354_v52, %v3324_v8 }
 0x2d9   : > { %v3287_v23 = vadd.f32 %v3286_v33, %v3285_v0  ;;  %v3356_v18 = vrot.slane %v3355_v37, 4 }
 0x2db   : > { %v3288_v19 = vrot.slane %v3287_v23, 2  ;;  %v3357_v2 = vadd.f32 %v3356_v18, %v3355_v37 }
 0x2dd   : > { %v3289_v43 = vadd.f32 %v3288_v19, %v3287_v23  ;;  %v3358_v17 = vrot.slane %v3357_v2, 2 }
 0x2df   : > { %v3290_v6 = vrot.slane %v3289_v43, 1  ;;  %v3359_v61 = vadd.f32 %v3358_v17, %v3357_v2 }
 0x2e1   : > { %v3291_v46 = vadd.f32 %v3290_v6, %v3289_v43  ;;  %v3360_v9 = vrot.slane %v3359_v61, 1 }
 0x2e3   : > { %3292 = vst [vmem:[%s181_s18] sm:$0x1] %v3291_v46  ;;  %v3361_v31 = vadd.f32 %v3360_v9, %v3359_v61 }
 0x2e5   : > { %3362 = vst [vmem:[%s181_s18 + $0x1] sm:$0x1] %v3361_v31 }
 0x2e6 PF: > { %s14_s12 = sadd.s32 1, %s3968_s12  }
 0x2e7   : > { %p11_p4 = scmp.ge.s32.totalorder %s14_s12, 4  }
 0x2e9   :  { %13 = sbr.rel (!%p11_p4) target bundleno = 1 (0x1), region = 72 }

</bundles_post_ra>
